<compile_context>
chip_gen: v5e
topology: v5e:2x2
jax: 0.10.0
libtpu: 0.0.40
codegen_flags: <defaults>
</compile_context>

<pallas_src>
import functools
import math

import jax
import jax.numpy as jnp
from jax.experimental import pallas as pl
from jax.experimental.pallas import tpu as pltpu  # noqa: F401  (TPU backend)

# ----------------------------- config ---------------------------------------
EMBED_DIM = 32
HIDDEN_DIM = 64
NUM_EMBEDDINGS = 50
NUM_MAX_POSITIONS = 16
NUM_HEADS = 4
NUM_LAYERS = 2
NUM_DIAC_LABELS = 16
CAUSAL = False
INITIALIZER_RANGE = 0.02
LN_EPS = 1e-12                      # nn.LayerNorm(embed_dim, eps=1e-12)
HEAD_DIM = EMBED_DIM // NUM_HEADS
NEG = -1e30

SEQ = 8
BATCH = 2
BS = SEQ * BATCH                    # flattened rows, SEQ-major: row = s*B + b
HBS = NUM_HEADS * BS
LANES = 128                         # lane-dense slab / output width

# ---- bf16 weight-slab row layout ([W_ROWS, 128]); every block starts at lane 0
W_QKV = 0                                   # [E, 3E]   fused q|k|v (transposed)
W_O = EMBED_DIM                             # [E, E]
W_FF1 = 2 * EMBED_DIM                       # [E, HID]
W_FF2 = 3 * EMBED_DIM                       # [HID, E]
W_PER_LAYER = 3 * EMBED_DIM + HIDDEN_DIM    # 160 rows / layer
W_DIAC = NUM_LAYERS * W_PER_LAYER           # [E, 128] (cols >= L are zero)
W_ROWS = W_DIAC + EMBED_DIM                 # 352

# ---- f32 const-slab row layout ([C_ROWS, 128])
C_HEADMASK = 0                              # [HBS, E]  head-selection mask
C_BIAS = HBS                                # [HBS, BS] static block-diag bias
C_VEC = 2 * HBS                             # per-layer vector rows
C_PER_LAYER = 8                             # ln1_g, ln1_b, ln2_g, ln2_b, bqkv, bo, b1, b2
C_ROWS = C_VEC + NUM_LAYERS * C_PER_LAYER   # 144


# --------------------------- small helpers -----------------------------------
def _bf16(x):
    return x.astype(jnp.bfloat16)


def _layer_norm(x, g, b):
    mu = jnp.mean(x, axis=-1, keepdims=True)
    var = jnp.mean((x - mu) * (x - mu), axis=-1, keepdims=True)
    return (x - mu) * jax.lax.rsqrt(var + LN_EPS) * g + b


# ------------------------- fused Pallas kernel --------------------------------
def fused_forward_kernel(h_ref, padbias_ref, cslab_ref, wslab_ref, out_ref):
    """Whole forward pass for the flattened (seq-major) batch.

    h_ref:       [BS, E]      f32 token+position embeddings, row = s*B + b.
    padbias_ref: [1, BS]      f32 per-call key bias (0 = valid, -1e30 = padded).
    cslab_ref:   [C_ROWS,128] f32 const slab (head mask, static bias, LN, biases).
    wslab_ref:   [W_ROWS,128] bf16 weight slab (all matmul weights, lane 0 aligned).
    out_ref:     [BS, 128]    f32 logits (single lane-dense store; cols >= L are 0).
    """
    E, H, HID = EMBED_DIM, NUM_HEADS, HIDDEN_DIM
    scale = jnp.float32(1.0 / math.sqrt(HEAD_DIM))

    h = h_ref[...]                                                   # [BS, E] f32

    # Precomputed masks (init-time) -- only one broadcast add remains in-kernel.
    head_mask = cslab_ref[C_HEADMASK:C_HEADMASK + HBS, 0:E]          # [HBS, E]
    bias_h = cslab_ref[C_BIAS:C_BIAS + HBS, 0:BS] + padbias_ref[...]  # [HBS, BS]

    for l in range(NUM_LAYERS):                                      # static unroll
        wb = l * W_PER_LAYER
        cb = C_VEC + l * C_PER_LAYER
        ln1_g = cslab_ref[cb + 0:cb + 1, 0:E]
        ln1_b = cslab_ref[cb + 1:cb + 2, 0:E]
        ln2_g = cslab_ref[cb + 2:cb + 3, 0:E]
        ln2_b = cslab_ref[cb + 3:cb + 4, 0:E]
        b_qkv = cslab_ref[cb + 4:cb + 5, 0:3 * E]
        b_o = cslab_ref[cb + 5:cb + 6, 0:E]
        b_1 = cslab_ref[cb + 6:cb + 7, 0:HID]
        b_2 = cslab_ref[cb + 7:cb + 8, 0:E]
        w_qkv = wslab_ref[wb + W_QKV:wb + W_QKV + E, 0:3 * E]        # [E, 3E]
        w_o = wslab_ref[wb + W_O:wb + W_O + E, 0:E]                  # [E, E]
        w_1 = wslab_ref[wb + W_FF1:wb + W_FF1 + E, 0:HID]            # [E, HID]
        w_2 = wslab_ref[wb + W_FF2:wb + W_FF2 + HID, 0:E]            # [HID, E]

        # ---- pre-LN 1 + fused QKV projection (one MXU pass, one bf16 cast) ---
        h1 = _layer_norm(h, ln1_g, ln1_b)                            # [BS, E]
        h1b = _bf16(h1)
        qkv = jnp.dot(h1b, w_qkv, preferred_element_type=jnp.float32) + b_qkv
        q = qkv[:, 0:E] * scale
        k = qkv[:, E:2 * E]
        v = qkv[:, 2 * E:3 * E]

        # All batches+heads at once: replicate q per head, zero other heads'
        # feature columns; block-diag + key-padding bias keeps batches apart.
        q_heads = jnp.concatenate([q] * H, axis=0) * head_mask       # [HBS, E]
        scores = jax.lax.dot_general(                                # [HBS, BS]
            _bf16(q_heads), _bf16(k), (((1,), (1,)), ((), ())),
            preferred_element_type=jnp.float32) + bias_h
        m = jnp.max(scores, axis=-1, keepdims=True)
        p = jnp.exp(scores - m)
        p = p * pl.reciprocal(jnp.sum(p, axis=-1, keepdims=True), approx=True)

        pv = jnp.dot(_bf16(p), _bf16(v),                             # [HBS, E]
                     preferred_element_type=jnp.float32) * head_mask
        # Recombine heads (tile-aligned row-block sum == concat of head outputs)
        attn = pv[0:BS]
        for hh in range(1, H):
            attn = attn + pv[hh * BS:(hh + 1) * BS]                  # [BS, E]
        attn = jnp.dot(_bf16(attn), w_o,
                       preferred_element_type=jnp.float32) + b_o
        h = attn + h1              # residual onto LN output (matches reference)

        # ---- pre-LN 2 + feed-forward -----------------------------------------
        h2 = _layer_norm(h, ln2_g, ln2_b)
        f = jnp.dot(_bf16(h2), w_1, preferred_element_type=jnp.float32) + b_1
        f = jnp.maximum(f, 0.0)
        f = jnp.dot(_bf16(f), w_2, preferred_element_type=jnp.float32) + b_2
        h = f + h2

    # ---- diacritization head (zero-padded to 128 lanes -> unmasked store) ----
    w_diac = wslab_ref[W_DIAC:W_DIAC + EMBED_DIM, :]                 # [E, 128]
    out_ref[...] = jnp.dot(_bf16(h), w_diac, preferred_element_type=jnp.float32)


def fused_forward(h0, padbias, cslab, wslab):
    """Single pallas_call, grid=(): every operand is a whole-array VMEM block
    (5 DMA descriptors total: 4 inputs + 1 lane-dense output)."""
    return pl.pallas_call(
        fused_forward_kernel,
        out_shape=jax.ShapeDtypeStruct((BS, LANES), jnp.float32),
    )(h0, padbias, cslab, wslab)


# ------------------------- parameter init ------------------------------------
def init_params(key):
    std = INITIALIZER_RANGE
    E, HID, L, NL = EMBED_DIM, HIDDEN_DIM, NUM_DIAC_LABELS, NUM_LAYERS
    keys = jax.random.split(key, 2 + 4 * NL + 1)

    def w(k, shape):
        return std * jax.random.normal(k, shape, jnp.float32)

    tok_emb = w(keys[0], (NUM_EMBEDDINGS, E))
    pos_emb = w(keys[1], (NUM_MAX_POSITIONS, E))

    # ---- bf16 weight slab: every matmul weight, lane-0 aligned, 128-lane rows
    wslab = jnp.zeros((W_ROWS, LANES), jnp.float32)
    ki = 2
    for l in range(NL):
        base = l * W_PER_LAYER
        # torch in_proj [3E, E] -> fused & transposed [E, 3E] (q | k | v)
        w_qkv = w(keys[ki], (E, 3 * E)); ki += 1
        w_o = w(keys[ki], (E, E)); ki += 1           # out_proj, transposed
        w_1 = w(keys[ki], (E, HID)); ki += 1         # ffn linear1, transposed
        w_2 = w(keys[ki], (HID, E)); ki += 1         # ffn linear2, transposed
        wslab = wslab.at[base + W_QKV:base + W_QKV + E, 0:3 * E].set(w_qkv)
        wslab = wslab.at[base + W_O:base + W_O + E, 0:E].set(w_o)
        wslab = wslab.at[base + W_FF1:base + W_FF1 + E, 0:HID].set(w_1)
        wslab = wslab.at[base + W_FF2:base + W_FF2 + HID, 0:E].set(w_2)
    # diac head: torch weight [L, E] (no bias), transposed + zero-padded to 128
    w_diac = w(keys[ki], (E, L))
    wslab = wslab.at[W_DIAC:W_DIAC + E, 0:L].set(w_diac)

    # ---- f32 const slab: masks (precomputed) + LN params + all biases -------
    cslab = jnp.zeros((C_ROWS, LANES), jnp.float32)
    # head-selection mask: row block hh keeps only head hh's feature columns
    row_head = jnp.arange(HBS)[:, None] // BS
    col_head = jnp.arange(E)[None, :] // HEAD_DIM
    cslab = cslab.at[C_HEADMASK:C_HEADMASK + HBS, 0:E].set(
        (row_head == col_head).astype(jnp.float32))
    # static attention bias: block-diagonal over batch (seq-major: batch = i % B)
    q_b = jnp.arange(BS)[:, None] % BATCH
    k_b = jnp.arange(BS)[None, :] % BATCH
    bias = jnp.where(q_b == k_b, jnp.float32(0.0), jnp.float32(NEG))
    if CAUSAL:
        q_s = jnp.arange(BS)[:, None] // BATCH
        k_s = jnp.arange(BS)[None, :] // BATCH
        bias = jnp.where(k_s > q_s, jnp.float32(NEG), bias)
    cslab = cslab.at[C_BIAS:C_BIAS + HBS, 0:BS].set(jnp.tile(bias, (NUM_HEADS, 1)))
    # per-layer LN gammas = 1; LN betas and all linear biases stay zero
    for l in range(NL):
        cb = C_VEC + l * C_PER_LAYER
        cslab = cslab.at[cb + 0, 0:E].set(1.0)       # ln1_g
        cslab = cslab.at[cb + 2, 0:E].set(1.0)       # ln2_g

    return {
        "tok_emb": tok_emb,
        "pos_emb": pos_emb,
        "cslab": cslab,
        "wslab": wslab.astype(jnp.bfloat16),
    }


# --------------------------- forward pass -------------------------------------
def diac_transformer_forward(params, x_sb, labels=None, padding_mask=None,
                             label_ignore_idx=-1):
    """x_sb: [S, B] int tokens; padding_mask: [B, S] bool (True = pad).
    Returns logits [S, B, NUM_DIAC_LABELS] (and mean CE loss if labels given)."""
    S, B = x_sb.shape

    # Seq-major flattened rows (row = s*B + b): no transposed gather on the way
    # in and no logits transpose on the way out.
    h = params["tok_emb"][x_sb] + params["pos_emb"][jnp.arange(S)][:, None, :]
    h0 = h.reshape(S * B, EMBED_DIM).astype(jnp.float32)              # [S*B, E]
    # TODO(synk): fold the embedding gather + padbias build into the kernel via
    # scalar-prefetched token ids (in-kernel dynamic row gather kept in XLA for now).

    if padding_mask is not None:
        padbias = jnp.where(padding_mask, jnp.float32(NEG),
                            jnp.float32(0.0)).T.reshape(1, S * B)
    else:
        padbias = jnp.zeros((1, S * B), jnp.float32)

    logits_pad = fused_forward(h0, padbias, params["cslab"], params["wslab"])
    logits = logits_pad[:, :NUM_DIAC_LABELS].reshape(S, B, NUM_DIAC_LABELS)

    if labels is not None:
        L = logits.shape[-1]
        lf = logits.reshape(-1, L)
        lb = labels.reshape(-1)
        logp = jax.nn.log_softmax(lf, axis=-1)
        valid = lb != label_ignore_idx
        lb_safe = jnp.where(valid, lb, 0)
        nll = -jnp.take_along_axis(logp, lb_safe[:, None], axis=-1)[:, 0]
        loss = jnp.sum(jnp.where(valid, nll, 0.0)) / jnp.maximum(jnp.sum(valid), 1)
        return logits, loss
    return logits


# ------------------------------- main -----------------------------------------
if __name__ == "__main__":
    key = jax.random.PRNGKey(0)
    k_param, k_tok, k_lab = jax.random.split(key, 3)

    params = init_params(k_param)

    # x: [seq, batch] tokens; padding_mask: [batch, seq] (True = padded position)
    x = jax.random.randint(k_tok, (SEQ, BATCH), 0, NUM_EMBEDDINGS, dtype=jnp.int32)
    lengths = jnp.array([SEQ, SEQ - 2], dtype=jnp.int32)
    padding_mask = jnp.arange(SEQ)[None, :] >= lengths[:, None]          # [B, S]
    labels = jax.random.randint(k_lab, (SEQ, BATCH), 0, NUM_DIAC_LABELS, dtype=jnp.int32)
    labels = labels.at[-2:, 1].set(-1)                                   # ignored positions

    fwd = jax.jit(functools.partial(diac_transformer_forward, params))
    logits, loss = fwd(x, labels=labels, padding_mask=padding_mask)
    jax.block_until_ready((logits, loss))

    assert logits.shape == (SEQ, BATCH, NUM_DIAC_LABELS), logits.shape
    assert bool(jnp.isfinite(loss)), loss
    print("KERNEL_OK")
</pallas_src>

<mosaic_0001>
module attributes {stable_mosaic.version = 11 : i64} {
  func.func @fused_forward_kernel(%arg0: memref<16x32xf32, #tpu.memory_space<vmem>>, %arg1: memref<1x16xf32, #tpu.memory_space<vmem>>, %arg2: memref<144x128xf32, #tpu.memory_space<vmem>>, %arg3: memref<352x128xbf16, #tpu.memory_space<vmem>>, %arg4: memref<16x128xf32, #tpu.memory_space<vmem>>) attributes {dimension_semantics = [], scalar_prefetch = 0 : i64, scratch_operands = 0 : i64, tpu.core_type = #tpu.core_type<tc>} {
    %c0 = arith.constant 0 : index
    %c0_0 = arith.constant 0 : index
    %0 = vector.load %arg0[%c0, %c0_0] : memref<16x32xf32, #tpu.memory_space<vmem>>, vector<16x32xf32>
    %c0_1 = arith.constant 0 : index
    %c0_2 = arith.constant 0 : index
    %1 = vector.load %arg2[%c0_1, %c0_2] : memref<144x128xf32, #tpu.memory_space<vmem>>, vector<64x32xf32>
    %c64 = arith.constant 64 : index
    %c0_3 = arith.constant 0 : index
    %2 = vector.load %arg2[%c64, %c0_3] : memref<144x128xf32, #tpu.memory_space<vmem>>, vector<64x16xf32>
    %c0_4 = arith.constant 0 : index
    %c0_5 = arith.constant 0 : index
    %3 = vector.load %arg1[%c0_4, %c0_5] : memref<1x16xf32, #tpu.memory_space<vmem>>, vector<1x16xf32>
    %4 = vector.broadcast %3 : vector<1x16xf32> to vector<64x16xf32>
    %5 = arith.addf %2, %4 : vector<64x16xf32>
    %c128 = arith.constant 128 : index
    %c0_6 = arith.constant 0 : index
    %6 = vector.load %arg2[%c128, %c0_6] : memref<144x128xf32, #tpu.memory_space<vmem>>, vector<1x32xf32>
    %c129 = arith.constant 129 : index
    %c0_7 = arith.constant 0 : index
    %7 = vector.load %arg2[%c129, %c0_7] : memref<144x128xf32, #tpu.memory_space<vmem>>, vector<1x32xf32>
    %c130 = arith.constant 130 : index
    %c0_8 = arith.constant 0 : index
    %8 = vector.load %arg2[%c130, %c0_8] : memref<144x128xf32, #tpu.memory_space<vmem>>, vector<1x32xf32>
    %c131 = arith.constant 131 : index
    %c0_9 = arith.constant 0 : index
    %9 = vector.load %arg2[%c131, %c0_9] : memref<144x128xf32, #tpu.memory_space<vmem>>, vector<1x32xf32>
    %c132 = arith.constant 132 : index
    %c0_10 = arith.constant 0 : index
    %10 = vector.load %arg2[%c132, %c0_10] : memref<144x128xf32, #tpu.memory_space<vmem>>, vector<1x96xf32>
    %c133 = arith.constant 133 : index
    %c0_11 = arith.constant 0 : index
    %11 = vector.load %arg2[%c133, %c0_11] : memref<144x128xf32, #tpu.memory_space<vmem>>, vector<1x32xf32>
    %c134 = arith.constant 134 : index
    %c0_12 = arith.constant 0 : index
    %12 = vector.load %arg2[%c134, %c0_12] : memref<144x128xf32, #tpu.memory_space<vmem>>, vector<1x64xf32>
    %c135 = arith.constant 135 : index
    %c0_13 = arith.constant 0 : index
    %13 = vector.load %arg2[%c135, %c0_13] : memref<144x128xf32, #tpu.memory_space<vmem>>, vector<1x32xf32>
    %c0_14 = arith.constant 0 : index
    %c0_15 = arith.constant 0 : index
    %14 = vector.load %arg3[%c0_14, %c0_15] : memref<352x128xbf16, #tpu.memory_space<vmem>>, vector<32x96xbf16>
    %c32 = arith.constant 32 : index
    %c0_16 = arith.constant 0 : index
    %15 = vector.load %arg3[%c32, %c0_16] : memref<352x128xbf16, #tpu.memory_space<vmem>>, vector<32x32xbf16>
    %c64_17 = arith.constant 64 : index
    %c0_18 = arith.constant 0 : index
    %16 = vector.load %arg3[%c64_17, %c0_18] : memref<352x128xbf16, #tpu.memory_space<vmem>>, vector<32x64xbf16>
    %c96 = arith.constant 96 : index
    %c0_19 = arith.constant 0 : index
    %17 = vector.load %arg3[%c96, %c0_19] : memref<352x128xbf16, #tpu.memory_space<vmem>>, vector<64x32xbf16>
    %cst = arith.constant dense<0.000000e+00> : vector<16xf32>
    %18 = vector.multi_reduction <add>, %0, %cst [1] : vector<16x32xf32> to vector<16xf32>
    %19 = vector.shape_cast %18 : vector<16xf32> to vector<16x1xf32>
    %cst_20 = arith.constant 3.200000e+01 : f32
    %20 = vector.broadcast %cst_20 : f32 to vector<16x1xf32>
    %21 = arith.divf %19, %20 : vector<16x1xf32>
    %22 = vector.broadcast %21 : vector<16x1xf32> to vector<16x32xf32>
    %23 = arith.subf %0, %22 : vector<16x32xf32>
    %24 = vector.broadcast %21 : vector<16x1xf32> to vector<16x32xf32>
    %25 = arith.subf %0, %24 : vector<16x32xf32>
    %26 = arith.mulf %23, %25 : vector<16x32xf32>
    %cst_21 = arith.constant dense<0.000000e+00> : vector<16xf32>
    %27 = vector.multi_reduction <add>, %26, %cst_21 [1] : vector<16x32xf32> to vector<16xf32>
    %28 = vector.shape_cast %27 : vector<16xf32> to vector<16x1xf32>
    %cst_22 = arith.constant 3.200000e+01 : f32
    %29 = vector.broadcast %cst_22 : f32 to vector<16x1xf32>
    %30 = arith.divf %28, %29 : vector<16x1xf32>
    %31 = vector.broadcast %21 : vector<16x1xf32> to vector<16x32xf32>
    %32 = arith.subf %0, %31 : vector<16x32xf32>
    %cst_23 = arith.constant 9.99999996E-13 : f32
    %33 = vector.broadcast %cst_23 : f32 to vector<16x1xf32>
    %34 = arith.addf %30, %33 : vector<16x1xf32>
    %35 = math.rsqrt %34 : vector<16x1xf32>
    %36 = vector.broadcast %35 : vector<16x1xf32> to vector<16x32xf32>
    %37 = arith.mulf %32, %36 : vector<16x32xf32>
    %38 = vector.broadcast %6 : vector<1x32xf32> to vector<16x32xf32>
    %39 = arith.mulf %37, %38 : vector<16x32xf32>
    %40 = vector.broadcast %7 : vector<1x32xf32> to vector<16x32xf32>
    %41 = arith.addf %39, %40 : vector<16x32xf32>
    %42 = arith.truncf %41 : vector<16x32xf32> to vector<16x32xbf16>
    %cst_24 = arith.constant dense<0.000000e+00> : vector<16x96xf32>
    %43 = tpu.matmul %42, %14, %cst_24 {dimension_numbers = #tpu.dot_dimension_numbers<[1], [0], [0], [1], [0, 0, 1, 1], [], []>} : vector<16x32xbf16>, vector<32x96xbf16>, vector<16x96xf32> -> vector<16x96xf32>
    %44 = vector.broadcast %10 : vector<1x96xf32> to vector<16x96xf32>
    %45 = arith.addf %43, %44 : vector<16x96xf32>
    %46 = vector.extract_strided_slice %45 {offsets = [0, 0], sizes = [16, 32], strides = [1, 1]} : vector<16x96xf32> to vector<16x32xf32>
    %cst_25 = arith.constant 0.353553385 : f32
    %47 = vector.broadcast %cst_25 : f32 to vector<16x32xf32>
    %48 = arith.mulf %46, %47 : vector<16x32xf32>
    %49 = vector.extract_strided_slice %45 {offsets = [0, 32], sizes = [16, 32], strides = [1, 1]} : vector<16x96xf32> to vector<16x32xf32>
    %50 = vector.extract_strided_slice %45 {offsets = [0, 64], sizes = [16, 32], strides = [1, 1]} : vector<16x96xf32> to vector<16x32xf32>
    %51 = tpu.concatenate %48, %48, %48, %48 in 0 : vector<16x32xf32>, vector<16x32xf32>, vector<16x32xf32>, vector<16x32xf32> -> vector<64x32xf32>
    %52 = arith.mulf %51, %1 : vector<64x32xf32>
    %53 = arith.truncf %52 : vector<64x32xf32> to vector<64x32xbf16>
    %54 = arith.truncf %49 : vector<16x32xf32> to vector<16x32xbf16>
    %cst_26 = arith.constant dense<0.000000e+00> : vector<64x16xf32>
    %55 = tpu.matmul %53, %54, %cst_26 {dimension_numbers = #tpu.dot_dimension_numbers<[1], [1], [0], [0], [0, 0, 1, 0], [], []>} : vector<64x32xbf16>, vector<16x32xbf16>, vector<64x16xf32> -> vector<64x16xf32>
    %56 = arith.addf %55, %5 : vector<64x16xf32>
    %cst_27 = arith.constant dense<0xFF800000> : vector<64xf32>
    %57 = vector.multi_reduction <maximumf>, %56, %cst_27 [1] : vector<64x16xf32> to vector<64xf32>
    %58 = vector.shape_cast %57 : vector<64xf32> to vector<64x1xf32>
    %59 = vector.broadcast %58 : vector<64x1xf32> to vector<64x16xf32>
    %60 = arith.subf %56, %59 : vector<64x16xf32>
    %61 = math.exp %60 : vector<64x16xf32>
    %cst_28 = arith.constant dense<0.000000e+00> : vector<64xf32>
    %62 = vector.multi_reduction <add>, %61, %cst_28 [1] : vector<64x16xf32> to vector<64xf32>
    %63 = vector.shape_cast %62 : vector<64xf32> to vector<64x1xf32>
    %64 = tpu.reciprocal %63 {approx = true} : vector<64x1xf32> -> vector<64x1xf32>
    %65 = vector.broadcast %64 : vector<64x1xf32> to vector<64x16xf32>
    %66 = arith.mulf %61, %65 : vector<64x16xf32>
    %67 = arith.truncf %66 : vector<64x16xf32> to vector<64x16xbf16>
    %68 = arith.truncf %50 : vector<16x32xf32> to vector<16x32xbf16>
    %cst_29 = arith.constant dense<0.000000e+00> : vector<64x32xf32>
    %69 = tpu.matmul %67, %68, %cst_29 {dimension_numbers = #tpu.dot_dimension_numbers<[1], [0], [0], [1], [0, 0, 1, 1], [], []>} : vector<64x16xbf16>, vector<16x32xbf16>, vector<64x32xf32> -> vector<64x32xf32>
    %70 = arith.mulf %69, %1 : vector<64x32xf32>
    %71 = vector.extract_strided_slice %70 {offsets = [0, 0], sizes = [16, 32], strides = [1, 1]} : vector<64x32xf32> to vector<16x32xf32>
    %72 = vector.extract_strided_slice %70 {offsets = [16, 0], sizes = [16, 32], strides = [1, 1]} : vector<64x32xf32> to vector<16x32xf32>
    %73 = arith.addf %71, %72 : vector<16x32xf32>
    %74 = vector.extract_strided_slice %70 {offsets = [32, 0], sizes = [16, 32], strides = [1, 1]} : vector<64x32xf32> to vector<16x32xf32>
    %75 = arith.addf %73, %74 : vector<16x32xf32>
    %76 = vector.extract_strided_slice %70 {offsets = [48, 0], sizes = [16, 32], strides = [1, 1]} : vector<64x32xf32> to vector<16x32xf32>
    %77 = arith.addf %75, %76 : vector<16x32xf32>
    %78 = arith.truncf %77 : vector<16x32xf32> to vector<16x32xbf16>
    %cst_30 = arith.constant dense<0.000000e+00> : vector<16x32xf32>
    %79 = tpu.matmul %78, %15, %cst_30 {dimension_numbers = #tpu.dot_dimension_numbers<[1], [0], [0], [1], [0, 0, 1, 1], [], []>} : vector<16x32xbf16>, vector<32x32xbf16>, vector<16x32xf32> -> vector<16x32xf32>
    %80 = vector.broadcast %11 : vector<1x32xf32> to vector<16x32xf32>
    %81 = arith.addf %79, %80 : vector<16x32xf32>
    %82 = arith.addf %81, %41 : vector<16x32xf32>
    %cst_31 = arith.constant dense<0.000000e+00> : vector<16xf32>
    %83 = vector.multi_reduction <add>, %82, %cst_31 [1] : vector<16x32xf32> to vector<16xf32>
    %84 = vector.shape_cast %83 : vector<16xf32> to vector<16x1xf32>
    %cst_32 = arith.constant 3.200000e+01 : f32
    %85 = vector.broadcast %cst_32 : f32 to vector<16x1xf32>
    %86 = arith.divf %84, %85 : vector<16x1xf32>
    %87 = vector.broadcast %86 : vector<16x1xf32> to vector<16x32xf32>
    %88 = arith.subf %82, %87 : vector<16x32xf32>
    %89 = vector.broadcast %86 : vector<16x1xf32> to vector<16x32xf32>
    %90 = arith.subf %82, %89 : vector<16x32xf32>
    %91 = arith.mulf %88, %90 : vector<16x32xf32>
    %cst_33 = arith.constant dense<0.000000e+00> : vector<16xf32>
    %92 = vector.multi_reduction <add>, %91, %cst_33 [1] : vector<16x32xf32> to vector<16xf32>
    %93 = vector.shape_cast %92 : vector<16xf32> to vector<16x1xf32>
    %cst_34 = arith.constant 3.200000e+01 : f32
    %94 = vector.broadcast %cst_34 : f32 to vector<16x1xf32>
    %95 = arith.divf %93, %94 : vector<16x1xf32>
    %96 = vector.broadcast %86 : vector<16x1xf32> to vector<16x32xf32>
    %97 = arith.subf %82, %96 : vector<16x32xf32>
    %cst_35 = arith.constant 9.99999996E-13 : f32
    %98 = vector.broadcast %cst_35 : f32 to vector<16x1xf32>
    %99 = arith.addf %95, %98 : vector<16x1xf32>
    %100 = math.rsqrt %99 : vector<16x1xf32>
    %101 = vector.broadcast %100 : vector<16x1xf32> to vector<16x32xf32>
    %102 = arith.mulf %97, %101 : vector<16x32xf32>
    %103 = vector.broadcast %8 : vector<1x32xf32> to vector<16x32xf32>
    %104 = arith.mulf %102, %103 : vector<16x32xf32>
    %105 = vector.broadcast %9 : vector<1x32xf32> to vector<16x32xf32>
    %106 = arith.addf %104, %105 : vector<16x32xf32>
    %107 = arith.truncf %106 : vector<16x32xf32> to vector<16x32xbf16>
    %cst_36 = arith.constant dense<0.000000e+00> : vector<16x64xf32>
    %108 = tpu.matmul %107, %16, %cst_36 {dimension_numbers = #tpu.dot_dimension_numbers<[1], [0], [0], [1], [0, 0, 1, 1], [], []>} : vector<16x32xbf16>, vector<32x64xbf16>, vector<16x64xf32> -> vector<16x64xf32>
    %109 = vector.broadcast %12 : vector<1x64xf32> to vector<16x64xf32>
    %110 = arith.addf %108, %109 : vector<16x64xf32>
    %cst_37 = arith.constant 0.000000e+00 : f32
    %111 = vector.broadcast %cst_37 : f32 to vector<16x64xf32>
    %112 = arith.maximumf %110, %111 : vector<16x64xf32>
    %113 = arith.truncf %112 : vector<16x64xf32> to vector<16x64xbf16>
    %cst_38 = arith.constant dense<0.000000e+00> : vector<16x32xf32>
    %114 = tpu.matmul %113, %17, %cst_38 {dimension_numbers = #tpu.dot_dimension_numbers<[1], [0], [0], [1], [0, 0, 1, 1], [], []>} : vector<16x64xbf16>, vector<64x32xbf16>, vector<16x32xf32> -> vector<16x32xf32>
    %115 = vector.broadcast %13 : vector<1x32xf32> to vector<16x32xf32>
    %116 = arith.addf %114, %115 : vector<16x32xf32>
    %117 = arith.addf %116, %106 : vector<16x32xf32>
    %c136 = arith.constant 136 : index
    %c0_39 = arith.constant 0 : index
    %118 = vector.load %arg2[%c136, %c0_39] : memref<144x128xf32, #tpu.memory_space<vmem>>, vector<1x32xf32>
    %c137 = arith.constant 137 : index
    %c0_40 = arith.constant 0 : index
    %119 = vector.load %arg2[%c137, %c0_40] : memref<144x128xf32, #tpu.memory_space<vmem>>, vector<1x32xf32>
    %c138 = arith.constant 138 : index
    %c0_41 = arith.constant 0 : index
    %120 = vector.load %arg2[%c138, %c0_41] : memref<144x128xf32, #tpu.memory_space<vmem>>, vector<1x32xf32>
    %c139 = arith.constant 139 : index
    %c0_42 = arith.constant 0 : index
    %121 = vector.load %arg2[%c139, %c0_42] : memref<144x128xf32, #tpu.memory_space<vmem>>, vector<1x32xf32>
    %c140 = arith.constant 140 : index
    %c0_43 = arith.constant 0 : index
    %122 = vector.load %arg2[%c140, %c0_43] : memref<144x128xf32, #tpu.memory_space<vmem>>, vector<1x96xf32>
    %c141 = arith.constant 141 : index
    %c0_44 = arith.constant 0 : index
    %123 = vector.load %arg2[%c141, %c0_44] : memref<144x128xf32, #tpu.memory_space<vmem>>, vector<1x32xf32>
    %c142 = arith.constant 142 : index
    %c0_45 = arith.constant 0 : index
    %124 = vector.load %arg2[%c142, %c0_45] : memref<144x128xf32, #tpu.memory_space<vmem>>, vector<1x64xf32>
    %c143 = arith.constant 143 : index
    %c0_46 = arith.constant 0 : index
    %125 = vector.load %arg2[%c143, %c0_46] : memref<144x128xf32, #tpu.memory_space<vmem>>, vector<1x32xf32>
    %c160 = arith.constant 160 : index
    %c0_47 = arith.constant 0 : index
    %126 = vector.load %arg3[%c160, %c0_47] : memref<352x128xbf16, #tpu.memory_space<vmem>>, vector<32x96xbf16>
    %c192 = arith.constant 192 : index
    %c0_48 = arith.constant 0 : index
    %127 = vector.load %arg3[%c192, %c0_48] : memref<352x128xbf16, #tpu.memory_space<vmem>>, vector<32x32xbf16>
    %c224 = arith.constant 224 : index
    %c0_49 = arith.constant 0 : index
    %128 = vector.load %arg3[%c224, %c0_49] : memref<352x128xbf16, #tpu.memory_space<vmem>>, vector<32x64xbf16>
    %c256 = arith.constant 256 : index
    %c0_50 = arith.constant 0 : index
    %129 = vector.load %arg3[%c256, %c0_50] : memref<352x128xbf16, #tpu.memory_space<vmem>>, vector<64x32xbf16>
    %cst_51 = arith.constant dense<0.000000e+00> : vector<16xf32>
    %130 = vector.multi_reduction <add>, %117, %cst_51 [1] : vector<16x32xf32> to vector<16xf32>
    %131 = vector.shape_cast %130 : vector<16xf32> to vector<16x1xf32>
    %cst_52 = arith.constant 3.200000e+01 : f32
    %132 = vector.broadcast %cst_52 : f32 to vector<16x1xf32>
    %133 = arith.divf %131, %132 : vector<16x1xf32>
    %134 = vector.broadcast %133 : vector<16x1xf32> to vector<16x32xf32>
    %135 = arith.subf %117, %134 : vector<16x32xf32>
    %136 = vector.broadcast %133 : vector<16x1xf32> to vector<16x32xf32>
    %137 = arith.subf %117, %136 : vector<16x32xf32>
    %138 = arith.mulf %135, %137 : vector<16x32xf32>
    %cst_53 = arith.constant dense<0.000000e+00> : vector<16xf32>
    %139 = vector.multi_reduction <add>, %138, %cst_53 [1] : vector<16x32xf32> to vector<16xf32>
    %140 = vector.shape_cast %139 : vector<16xf32> to vector<16x1xf32>
    %cst_54 = arith.constant 3.200000e+01 : f32
    %141 = vector.broadcast %cst_54 : f32 to vector<16x1xf32>
    %142 = arith.divf %140, %141 : vector<16x1xf32>
    %143 = vector.broadcast %133 : vector<16x1xf32> to vector<16x32xf32>
    %144 = arith.subf %117, %143 : vector<16x32xf32>
    %cst_55 = arith.constant 9.99999996E-13 : f32
    %145 = vector.broadcast %cst_55 : f32 to vector<16x1xf32>
    %146 = arith.addf %142, %145 : vector<16x1xf32>
    %147 = math.rsqrt %146 : vector<16x1xf32>
    %148 = vector.broadcast %147 : vector<16x1xf32> to vector<16x32xf32>
    %149 = arith.mulf %144, %148 : vector<16x32xf32>
    %150 = vector.broadcast %118 : vector<1x32xf32> to vector<16x32xf32>
    %151 = arith.mulf %149, %150 : vector<16x32xf32>
    %152 = vector.broadcast %119 : vector<1x32xf32> to vector<16x32xf32>
    %153 = arith.addf %151, %152 : vector<16x32xf32>
    %154 = arith.truncf %153 : vector<16x32xf32> to vector<16x32xbf16>
    %cst_56 = arith.constant dense<0.000000e+00> : vector<16x96xf32>
    %155 = tpu.matmul %154, %126, %cst_56 {dimension_numbers = #tpu.dot_dimension_numbers<[1], [0], [0], [1], [0, 0, 1, 1], [], []>} : vector<16x32xbf16>, vector<32x96xbf16>, vector<16x96xf32> -> vector<16x96xf32>
    %156 = vector.broadcast %122 : vector<1x96xf32> to vector<16x96xf32>
    %157 = arith.addf %155, %156 : vector<16x96xf32>
    %158 = vector.extract_strided_slice %157 {offsets = [0, 0], sizes = [16, 32], strides = [1, 1]} : vector<16x96xf32> to vector<16x32xf32>
    %cst_57 = arith.constant 0.353553385 : f32
    %159 = vector.broadcast %cst_57 : f32 to vector<16x32xf32>
    %160 = arith.mulf %158, %159 : vector<16x32xf32>
    %161 = vector.extract_strided_slice %157 {offsets = [0, 32], sizes = [16, 32], strides = [1, 1]} : vector<16x96xf32> to vector<16x32xf32>
    %162 = vector.extract_strided_slice %157 {offsets = [0, 64], sizes = [16, 32], strides = [1, 1]} : vector<16x96xf32> to vector<16x32xf32>
    %163 = tpu.concatenate %160, %160, %160, %160 in 0 : vector<16x32xf32>, vector<16x32xf32>, vector<16x32xf32>, vector<16x32xf32> -> vector<64x32xf32>
    %164 = arith.mulf %163, %1 : vector<64x32xf32>
    %165 = arith.truncf %164 : vector<64x32xf32> to vector<64x32xbf16>
    %166 = arith.truncf %161 : vector<16x32xf32> to vector<16x32xbf16>
    %cst_58 = arith.constant dense<0.000000e+00> : vector<64x16xf32>
    %167 = tpu.matmul %165, %166, %cst_58 {dimension_numbers = #tpu.dot_dimension_numbers<[1], [1], [0], [0], [0, 0, 1, 0], [], []>} : vector<64x32xbf16>, vector<16x32xbf16>, vector<64x16xf32> -> vector<64x16xf32>
    %168 = arith.addf %167, %5 : vector<64x16xf32>
    %cst_59 = arith.constant dense<0xFF800000> : vector<64xf32>
    %169 = vector.multi_reduction <maximumf>, %168, %cst_59 [1] : vector<64x16xf32> to vector<64xf32>
    %170 = vector.shape_cast %169 : vector<64xf32> to vector<64x1xf32>
    %171 = vector.broadcast %170 : vector<64x1xf32> to vector<64x16xf32>
    %172 = arith.subf %168, %171 : vector<64x16xf32>
    %173 = math.exp %172 : vector<64x16xf32>
    %cst_60 = arith.constant dense<0.000000e+00> : vector<64xf32>
    %174 = vector.multi_reduction <add>, %173, %cst_60 [1] : vector<64x16xf32> to vector<64xf32>
    %175 = vector.shape_cast %174 : vector<64xf32> to vector<64x1xf32>
    %176 = tpu.reciprocal %175 {approx = true} : vector<64x1xf32> -> vector<64x1xf32>
    %177 = vector.broadcast %176 : vector<64x1xf32> to vector<64x16xf32>
    %178 = arith.mulf %173, %177 : vector<64x16xf32>
    %179 = arith.truncf %178 : vector<64x16xf32> to vector<64x16xbf16>
    %180 = arith.truncf %162 : vector<16x32xf32> to vector<16x32xbf16>
    %cst_61 = arith.constant dense<0.000000e+00> : vector<64x32xf32>
    %181 = tpu.matmul %179, %180, %cst_61 {dimension_numbers = #tpu.dot_dimension_numbers<[1], [0], [0], [1], [0, 0, 1, 1], [], []>} : vector<64x16xbf16>, vector<16x32xbf16>, vector<64x32xf32> -> vector<64x32xf32>
    %182 = arith.mulf %181, %1 : vector<64x32xf32>
    %183 = vector.extract_strided_slice %182 {offsets = [0, 0], sizes = [16, 32], strides = [1, 1]} : vector<64x32xf32> to vector<16x32xf32>
    %184 = vector.extract_strided_slice %182 {offsets = [16, 0], sizes = [16, 32], strides = [1, 1]} : vector<64x32xf32> to vector<16x32xf32>
    %185 = arith.addf %183, %184 : vector<16x32xf32>
    %186 = vector.extract_strided_slice %182 {offsets = [32, 0], sizes = [16, 32], strides = [1, 1]} : vector<64x32xf32> to vector<16x32xf32>
    %187 = arith.addf %185, %186 : vector<16x32xf32>
    %188 = vector.extract_strided_slice %182 {offsets = [48, 0], sizes = [16, 32], strides = [1, 1]} : vector<64x32xf32> to vector<16x32xf32>
    %189 = arith.addf %187, %188 : vector<16x32xf32>
    %190 = arith.truncf %189 : vector<16x32xf32> to vector<16x32xbf16>
    %cst_62 = arith.constant dense<0.000000e+00> : vector<16x32xf32>
    %191 = tpu.matmul %190, %127, %cst_62 {dimension_numbers = #tpu.dot_dimension_numbers<[1], [0], [0], [1], [0, 0, 1, 1], [], []>} : vector<16x32xbf16>, vector<32x32xbf16>, vector<16x32xf32> -> vector<16x32xf32>
    %192 = vector.broadcast %123 : vector<1x32xf32> to vector<16x32xf32>
    %193 = arith.addf %191, %192 : vector<16x32xf32>
    %194 = arith.addf %193, %153 : vector<16x32xf32>
    %cst_63 = arith.constant dense<0.000000e+00> : vector<16xf32>
    %195 = vector.multi_reduction <add>, %194, %cst_63 [1] : vector<16x32xf32> to vector<16xf32>
    %196 = vector.shape_cast %195 : vector<16xf32> to vector<16x1xf32>
    %cst_64 = arith.constant 3.200000e+01 : f32
    %197 = vector.broadcast %cst_64 : f32 to vector<16x1xf32>
    %198 = arith.divf %196, %197 : vector<16x1xf32>
    %199 = vector.broadcast %198 : vector<16x1xf32> to vector<16x32xf32>
    %200 = arith.subf %194, %199 : vector<16x32xf32>
    %201 = vector.broadcast %198 : vector<16x1xf32> to vector<16x32xf32>
    %202 = arith.subf %194, %201 : vector<16x32xf32>
    %203 = arith.mulf %200, %202 : vector<16x32xf32>
    %cst_65 = arith.constant dense<0.000000e+00> : vector<16xf32>
    %204 = vector.multi_reduction <add>, %203, %cst_65 [1] : vector<16x32xf32> to vector<16xf32>
    %205 = vector.shape_cast %204 : vector<16xf32> to vector<16x1xf32>
    %cst_66 = arith.constant 3.200000e+01 : f32
    %206 = vector.broadcast %cst_66 : f32 to vector<16x1xf32>
    %207 = arith.divf %205, %206 : vector<16x1xf32>
    %208 = vector.broadcast %198 : vector<16x1xf32> to vector<16x32xf32>
    %209 = arith.subf %194, %208 : vector<16x32xf32>
    %cst_67 = arith.constant 9.99999996E-13 : f32
    %210 = vector.broadcast %cst_67 : f32 to vector<16x1xf32>
    %211 = arith.addf %207, %210 : vector<16x1xf32>
    %212 = math.rsqrt %211 : vector<16x1xf32>
    %213 = vector.broadcast %212 : vector<16x1xf32> to vector<16x32xf32>
    %214 = arith.mulf %209, %213 : vector<16x32xf32>
    %215 = vector.broadcast %120 : vector<1x32xf32> to vector<16x32xf32>
    %216 = arith.mulf %214, %215 : vector<16x32xf32>
    %217 = vector.broadcast %121 : vector<1x32xf32> to vector<16x32xf32>
    %218 = arith.addf %216, %217 : vector<16x32xf32>
    %219 = arith.truncf %218 : vector<16x32xf32> to vector<16x32xbf16>
    %cst_68 = arith.constant dense<0.000000e+00> : vector<16x64xf32>
    %220 = tpu.matmul %219, %128, %cst_68 {dimension_numbers = #tpu.dot_dimension_numbers<[1], [0], [0], [1], [0, 0, 1, 1], [], []>} : vector<16x32xbf16>, vector<32x64xbf16>, vector<16x64xf32> -> vector<16x64xf32>
    %221 = vector.broadcast %124 : vector<1x64xf32> to vector<16x64xf32>
    %222 = arith.addf %220, %221 : vector<16x64xf32>
    %cst_69 = arith.constant 0.000000e+00 : f32
    %223 = vector.broadcast %cst_69 : f32 to vector<16x64xf32>
    %224 = arith.maximumf %222, %223 : vector<16x64xf32>
    %225 = arith.truncf %224 : vector<16x64xf32> to vector<16x64xbf16>
    %cst_70 = arith.constant dense<0.000000e+00> : vector<16x32xf32>
    %226 = tpu.matmul %225, %129, %cst_70 {dimension_numbers = #tpu.dot_dimension_numbers<[1], [0], [0], [1], [0, 0, 1, 1], [], []>} : vector<16x64xbf16>, vector<64x32xbf16>, vector<16x32xf32> -> vector<16x32xf32>
    %227 = vector.broadcast %125 : vector<1x32xf32> to vector<16x32xf32>
    %228 = arith.addf %226, %227 : vector<16x32xf32>
    %229 = arith.addf %228, %218 : vector<16x32xf32>
    %c320 = arith.constant 320 : index
    %c0_71 = arith.constant 0 : index
    %230 = vector.load %arg3[%c320, %c0_71] : memref<352x128xbf16, #tpu.memory_space<vmem>>, vector<32x128xbf16>
    %231 = arith.truncf %229 : vector<16x32xf32> to vector<16x32xbf16>
    %cst_72 = arith.constant dense<0.000000e+00> : vector<16x128xf32>
    %232 = tpu.matmul %231, %230, %cst_72 {dimension_numbers = #tpu.dot_dimension_numbers<[1], [0], [0], [1], [0, 0, 1, 1], [], []>} : vector<16x32xbf16>, vector<32x128xbf16>, vector<16x128xf32> -> vector<16x128xf32>
    %c0_73 = arith.constant 0 : index
    %c0_74 = arith.constant 0 : index
    %233 = vector.load %arg4[%c0_73, %c0_74] : memref<16x128xf32, #tpu.memory_space<vmem>>, vector<16x128xf32>
    tpu.vector_store %arg4[%c0_73, %c0_74], %232 {strides = array<i32>} : memref<16x128xf32, #tpu.memory_space<vmem>>, vector<16x128xf32>,
    return
  }
}

</mosaic_0001>

<bundles_post_ra>
// kernel: diac_transformer_forward.1
= control target key start
LH: loop header
LB: loop body
LE: loop exit
PB: predicated region body
PF: predicated region fallthrough
CT: control target
= control target key end

     0   :  { %9 = vsyncpa [#allocation3], 0  ;;  %s1353_s18 = smov [#allocation2]   ;;  %s1354_s20 = smov 128   ;;  %s1661_s0 = inlined_call_operand.vmem [shape: f32[16,32], index: 0, kind: input, shape index: {}]   ;;  %s1662_s1 = inlined_call_operand.vmem [shape: f32[1,16], index: 1, kind: input, shape index: {}]   ;;  %s1663_s2 = inlined_call_operand.hbm [shape: f32[144,128], index: 2, kind: input, shape index: {}]   ;;  %s1664_s3 = inlined_call_operand.vmem [shape: bf16[352,128], index: 3, kind: input, shape index: {}]   ;;  %s1665_s4 = inlined_call_operand.vmem [shape: f32[16,128], index: 4, kind: output, shape index: {}]  }
   0x1   :  { %s18_s17 = sshll.u32 %s1663_s2, 4  ;;  %s20_s19 = sshll.u32 %s1353_s18, 4  ;;  %s19_s17 = int_to_ptr.hbm [resolvable:$true] %s18_s17  ;;  %s21_s19 = int_to_ptr.vmem [resolvable:$true] %s20_s19 }
   0x2   :  { %s1355_s21 = smov 8  }
   0x3   :  { %26 = dma.hbm_to_vmem [thread:$0]  %s19_s17, 2304, %s21_s19, [#allocation3], %s1354_s20, %s1354_s20, %s1355_s21  }
   0x4   :  { %1351 = dma.done.wait [#allocation3], 2304  }
   0x5   :  { %1352 = vsyncadd [#allocation3], 4294964992  ;;  %vm92_vm0 = vcmask 261120   ;;  %v34_v0 = vld [vmem:[%s1661_s0] sm:$0xff]  ;;  %v35_v2 = vld [vmem:[%s1661_s0 + $0x8] sm:$0xff]  ;;  %v1356_v4 = vmov 32.0  }
   0x6   :  { %v93_v1 = vsel %vm92_vm0, %v34_v0, 0.0  ;;  %v96_v3 = vsel %vm92_vm0, %v35_v2, 0.0  ;;  %1237 = vrcp.f32 %v1356_v4  ;;  %v1193_v21 = vld [vmem:[%s1664_s3 + $0x8] sm:$0xff]  ;;  %v1192_v23 = vld [vmem:[%s1664_s3] sm:$0xff]  ;;  %v1418_v58 = vld [vmem:[#allocation2 + $0x10] sm:$0xff]  ;;  %s1357_s28 = smov 96  }
   0x7   :  { %94 = vadd.xlane.f32.xlu0 %v93_v1  ;;  %173 = vmatpush.bf16.msra.mxu0 %v1193_v21  ;;  %v1220_v42 = vld [vmem:[#allocation2 + $0x80] ss:$0 sm:$0xff]  ;;  %v1221_v47 = vld [vmem:[#allocation2 + $0x81] ss:$0 sm:$0xff]  ;;  %v1222_v52 = vld [vmem:[#allocation2 + $0x84] ss:$0 sm:$0xff] }
   0x8   :  { %v1416_v57 = vld [vmem:[#allocation2] sm:$0xff]  ;;  %v1420_v60 = vld [vmem:[#allocation2 + $0x8] sm:$0xff]  ;;  %v1424_v62 = vld [vmem:[#allocation2 + $0x30] sm:$0xff]  ;;  %vm243_vm8 = vcmask 130048   ;;  %vm536_vm15 = vcmask 523264  }
   0x9   :  { %v1422_v61 = vld [vmem:[#allocation2 + $0x20] sm:$0xff]  ;;  %v1426_v63 = vld [vmem:[#allocation2 + $0x18] sm:$0xff] }
   0xa   :  { %v1430_v1 = vld [vmem:[#allocation2 + $0x38] sm:$0xff] }
   0xb   :  { %174 = vmatpush.bf16.msra.mxu0 %v1192_v23 }
   0xc   :  { %v1238_v5 = vpop.eup %1237 }
   0xd   :  { %v100_v6 = vmul.f32 32.0, %v1238_v5  ;;  %vm104_vm1 = vweird.f32 %v1238_v5 }
   0xf   :  { %97 = vadd.xlane.f32.xlu0 %v96_v3  ;;  %v101_v7 = vsub.f32 1.0, %v100_v6 }
  0x11   :  { %v102_v8 = vmul.f32 %v1238_v5, %v101_v7 }
  0x13   :  { %v103_v9 = vadd.f32 %v1238_v5, %v102_v8 }
  0x15   :  { %v1395_v10 = vsel %vm104_vm1, %v1238_v5, %v103_v9 }
  0x7a   :  { %v95_v11 = vpop.xlane.xlu0 %94 }
  0x7b   :  { %v106_v12 = vmul.f32 %v1395_v10, %v95_v11 }
  0x7d   :  { %v108_v13 = vsub.f32 %v34_v0, %v106_v12  ;;  %v1428_v0 = vld [vmem:[#allocation2 + $0x28] sm:$0xff] }
  0x7f   :  { %v110_v14 = vmul.f32 %v108_v13, %v108_v13 }
  0x81   :  { %v112_v15 = vsel %vm92_vm0, %v110_v14, 0.0 }
  0x82   :  { %113 = vadd.xlane.f32.xlu1 %v112_v15  ;;  %v98_v16 = vpop.xlane.xlu0 %97 }
  0x83   :  { %v107_v17 = vmul.f32 %v1395_v10, %v98_v16 }
  0x85   :  { %v109_v18 = vsub.f32 %v35_v2, %v107_v17 }
  0x87   :  { %v111_v19 = vmul.f32 %v109_v18, %v109_v18 }
  0x89   :  { %v115_v20 = vsel %vm92_vm0, %v111_v19, 0.0  ;;  %v1223_v19 = vld [vmem:[%s1662_s1] ss:$0 sm:$0xff]  ;;  %s1358_s1 = smov 64  }
  0x8a   :  { %116 = vadd.xlane.f32.xlu1 %v115_v20  ;;  %v44_v20 = vld [vmem:[#allocation2 + $0x40] sm:$0xff] }
  0x8b   :  { %v1452_v21 = vadd.f32 %v1223_v19, %v44_v20 }
  0xf5   :  { %v114_v22 = vpop.xlane.xlu1 %113 }
  0xf6   :  { %v118_v24 = vmul.f32 %v114_v22, %v1395_v10 }
  0xf8   :  { %v120_v25 = vadd.f32 1e-12, %v118_v24  ;;  %v45_v24 = vld [vmem:[#allocation2 + $0x48] sm:$0xff] }
  0xfa   :  { %1239 = vrsqrt.f32 %v120_v25  ;;  %vm128_vm3 = vweird.f32 %v120_v25 }
  0xfd   :  { %v117_v26 = vpop.xlane.xlu1 %116 }
  0xfe   :  { %v119_v27 = vmul.f32 %v117_v26, %v1395_v10  ;;  %v1456_v26 = vadd.f32 %v1223_v19, %v45_v24 }
 0x100   :  { %v1240_v28 = vpop.eup %1239  ;;  %v121_v29 = vadd.f32 1e-12, %v119_v27 }
 0x101   :  { %v123_v30 = vmul.f32 %v1240_v28, %v120_v25  ;;  %vm129_vm2 = vweird.f32 %v1240_v28 }
 0x102   :  { %1241 = vrsqrt.f32 %v121_v29  ;;  %vm130_vm4 = vmor %vm128_vm3, %vm129_vm2  ;;  %vm138_vm6 = vweird.f32 %v121_v29 }
 0x103   :  { %v124_v31 = vmul.f32 %v1240_v28, %v123_v30 }
 0x105   :  { %v125_v32 = vmul.f32 0.5, %v124_v31 }
 0x107   :  { %v126_v33 = vsub.f32 1.5, %v125_v32 }
 0x108   :  { %v1242_v34 = vpop.eup %1241 }
 0x109   :  { %v127_v35 = vmul.f32 %v1240_v28, %v126_v33  ;;  %v133_v36 = vmul.f32 %v1242_v34, %v121_v29  ;;  %vm139_vm5 = vweird.f32 %v1242_v34  ;;  %v46_v29 = vld [vmem:[#allocation2 + $0x50] sm:$0xff] }
 0x10a   :  { %vm140_vm7 = vmor %vm138_vm6, %vm139_vm5  ;;  %v1460_v31 = vadd.f32 %v1223_v19, %v46_v29 }
 0x10b   :  { %v134_v37 = vmul.f32 %v1242_v34, %v133_v36  ;;  %v131_v38 = vsel %vm130_vm4, %v1240_v28, %v127_v35 }
 0x10c   :  { %v142_v41 = vmul.f32 %v131_v38, %v108_v13 }
 0x10d   :  { %v135_v39 = vmul.f32 0.5, %v134_v37 }
 0x10e   :  { %v145_v46 = vmul.f32 %v1220_v42, %v142_v41 }
 0x10f   :  { %v136_v40 = vsub.f32 1.5, %v135_v39  ;;  %v48_v39 = vld [vmem:[#allocation2 + $0x60] sm:$0xff] }
 0x110   :  { %v1409_v49 = vadd.f32 %v1221_v47, %v145_v46  ;;  %v1468_v41 = vadd.f32 %v1223_v19, %v48_v39 }
 0x111   :  { %v137_v43 = vmul.f32 %v1242_v34, %v136_v40 }
 0x113   :  { %v141_v44 = vsel %vm140_vm7, %v1242_v34, %v137_v43  ;;  %v47_v34 = vld [vmem:[#allocation2 + $0x58] sm:$0xff] }
 0x114   :  { %v143_v45 = vmul.f32 %v141_v44, %v109_v18  ;;  %v1464_v36 = vadd.f32 %v1223_v19, %v47_v34  ;;  %v49_v44 = vld [vmem:[#allocation2 + $0x68] sm:$0xff] }
 0x115   :  { %v1472_v46 = vadd.f32 %v1223_v19, %v49_v44 }
 0x116   :  { %v146_v48 = vmul.f32 %v1220_v42, %v143_v45 }
 0x118   :  { %v1411_v50 = vadd.f32 %v1221_v47, %v146_v48 }
 0x11a   :  { %v150_v51 = vpack.c.bf16 %v1411_v50, %v1409_v49 }
 0x11c   :  { %1087 = vmatmul.msk.bf16.vlgmr.msra.gmra.mxu0 %vm92_vm0, %v150_v51  ;;  %v50_v51 = vld [vmem:[#allocation2 + $0x70] sm:$0xff] }
 0x199   :  { %v176_v53 = vpop.f32.mrf.mxu0 }
 0x19a   :  { %v177_v54 = vadd.f32 %v1222_v52, %v176_v53  ;;  %v1476_v53 = vadd.f32 %v1223_v19, %v50_v51 }
 0x19c   :  { %v181_v55 = vmul.f32 0.35355338, %v177_v54 }
 0x19e   :  { %v183_v4 = vmul.f32 %v181_v55, %v1416_v57  ;;  %v185_v5 = vmul.f32 %v181_v55, %v1418_v58  ;;  %v187_v6 = vmul.f32 %v181_v55, %v1422_v61  ;;  %v189_v7 = vmul.f32 %v181_v55, %v1424_v62 }
 0x1a1   :  { %v178_v56 = vpop.f32.mrf.mxu0 }
 0x1a2   :  { %v179_v59 = vadd.f32 %v1222_v52, %v178_v56  ;;  %v51_v56 = vld [vmem:[#allocation2 + $0x78] sm:$0xff] }
 0x1a4   :  { %v182_v2 = vmul.f32 0.35355338, %v179_v59  ;;  %v1432_v3 = vpack.c.bf16 %v179_v59, %v177_v54 }
 0x1a6   :  { %197 = vrot.lane.b32.xlu2 %v1432_v3, %s1357_s28  ;;  %v184_v8 = vmul.f32 %v182_v2, %v1420_v60  ;;  %v186_v9 = vmul.f32 %v182_v2, %v1426_v63  ;;  %v188_v11 = vmul.f32 %v182_v2, %v1428_v0  ;;  %v190_v12 = vmul.f32 %v182_v2, %v1430_v1 }
 0x1a7   :  { %v1480_v2 = vadd.f32 %v1223_v19, %v51_v56 }
 0x1a8   :  { %v191_v13 = vpack.c.bf16 %v184_v8, %v183_v4  ;;  %v192_v14 = vpack.c.bf16 %v186_v9, %v185_v5  ;;  %v193_v15 = vpack.c.bf16 %v188_v11, %v187_v6  ;;  %v194_v16 = vpack.c.bf16 %v190_v12, %v189_v7 }
 0x200   :  { %v198_v17 = vpop.permute.xlu2 %197 }
 0x201   :  { %v212_v18 = vsel %vm92_vm0, %v198_v17, 0 }
 0x202   :  { %221 = vmatpush.bf16.xpose.msra.mxu1 %v212_v18 }
 0x209   :  { %1088 = vmatmul.msk.bf16.vlgmr.msra.gmra.mxu1 %vm92_vm0, %v191_v13 }
 0x219   :  { %1089 = vmatmul.msk.bf16.gmra.mxu1 %vm92_vm0, %v192_v14 }
 0x229   :  { %1090 = vmatmul.msk.bf16.gmra.mxu1 %vm92_vm0, %v193_v15 }
 0x239   :  { %1091 = vmatmul.msk.bf16.gmra.mxu1 %vm92_vm0, %v194_v16 }
 0x286   :  { %v223_v22 = vpop.f32.mrf.mxu1 }
 0x287   :  { %v224_v23 = vadd.f32 %v223_v22, %v1452_v21 }
 0x289   :  { %v244_v25 = vsel %vm243_vm8, %v224_v23, -inf }
 0x28a   :  { %245 = vmax.xlane.f32.xlu2 %v244_v25 }
 0x28e   :  { %v225_v27 = vpop.f32.mrf.mxu1 }
 0x28f   :  { %v226_v28 = vadd.f32 %v225_v27, %v1456_v26 }
 0x291   :  { %v247_v30 = vsel %vm243_vm8, %v226_v28, -inf }
 0x292   :  { %248 = vmax.xlane.f32.xlu0 %v247_v30 }
 0x296   :  { %v228_v32 = vpop.f32.mrf.mxu1 }
 0x297   :  { %v229_v33 = vadd.f32 %v228_v32, %v1460_v31 }
 0x299   :  { %v250_v35 = vsel %vm243_vm8, %v229_v33, -inf }
 0x29a   :  { %251 = vmax.xlane.f32.xlu1 %v250_v35 }
 0x29e   :  { %v230_v37 = vpop.f32.mrf.mxu1 }
 0x29f   :  { %v231_v38 = vadd.f32 %v230_v37, %v1464_v36 }
 0x2a1   :  { %v253_v40 = vsel %vm243_vm8, %v231_v38, -inf }
 0x2a2   :  { %254 = vmax.xlane.f32.xlu0 %v253_v40 }
 0x2a6   :  { %v233_v42 = vpop.f32.mrf.mxu1 }
 0x2a7   :  { %v234_v43 = vadd.f32 %v233_v42, %v1468_v41 }
 0x2a9   :  { %v256_v45 = vsel %vm243_vm8, %v234_v43, -inf }
 0x2aa   :  { %257 = vmax.xlane.f32.xlu1 %v256_v45 }
 0x2ae   :  { %v235_v47 = vpop.f32.mrf.mxu1 }
 0x2af   :  { %v236_v48 = vadd.f32 %v235_v47, %v1472_v46 }
 0x2b1   :  { %v259_v52 = vsel %vm243_vm8, %v236_v48, -inf }
 0x2b2   :  { %260 = vmax.xlane.f32.xlu0 %v259_v52 }
 0x2b6   :  { %v238_v54 = vpop.f32.mrf.mxu1 }
 0x2b7   :  { %v239_v55 = vadd.f32 %v238_v54, %v1476_v53 }
 0x2b9   :  { %v262_v59 = vsel %vm243_vm8, %v239_v55, -inf }
 0x2ba   :  { %263 = vmax.xlane.f32.xlu1 %v262_v59 }
 0x2be   :  { %v240_v4 = vpop.f32.mrf.mxu1 }
 0x2bf   :  { %v241_v5 = vadd.f32 %v240_v4, %v1480_v2 }
 0x2c1   :  { %v265_v6 = vsel %vm243_vm8, %v241_v5, -inf }
 0x2c2   :  { %266 = vmax.xlane.f32.xlu0 %v265_v6 }
 0x2fd   :  { %v246_v7 = vpop.xlane.xlu2 %245 }
 0x2fe   :  { %v268_v8 = vsub.f32 %v224_v23, %v246_v7 }
 0x300   :  { %v276_v9 = vmul.f32 1.442695, %v268_v8 }
 0x302   :  { %1243 = vpow2.f32 %v276_v9 }
 0x305   :  { %v249_v11 = vpop.xlane.xlu0 %248 }
 0x306   :  { %v269_v12 = vsub.f32 %v226_v28, %v249_v11 }
 0x308   :  { %v1244_v13 = vpop.eup %1243  ;;  %v278_v14 = vmul.f32 1.442695, %v269_v12 }
 0x309   :  { %v292_v15 = vsel %vm243_vm8, %v1244_v13, 0.0 }
 0x30a   :  { %1245 = vpow2.f32 %v278_v14  ;;  %293 = vadd.xlane.f32.xlu1 %v292_v15 }
 0x30d   :  { %v252_v16 = vpop.xlane.xlu1 %251 }
 0x30e   :  { %v270_v17 = vsub.f32 %v229_v33, %v252_v16 }
 0x310   :  { %v1246_v18 = vpop.eup %1245  ;;  %v280_v19 = vmul.f32 1.442695, %v270_v17 }
 0x311   :  { %v295_v20 = vsel %vm243_vm8, %v1246_v18, 0.0 }
 0x312   :  { %1247 = vpow2.f32 %v280_v19  ;;  %296 = vadd.xlane.f32.xlu0 %v295_v20 }
 0x315   :  { %v255_v22 = vpop.xlane.xlu0 %254 }
 0x316   :  { %v271_v23 = vsub.f32 %v231_v38, %v255_v22 }
 0x318   :  { %v1248_v24 = vpop.eup %1247  ;;  %v282_v25 = vmul.f32 1.442695, %v271_v23 }
 0x319   :  { %v298_v27 = vsel %vm243_vm8, %v1248_v24, 0.0 }
 0x31a   :  { %1249 = vpow2.f32 %v282_v25  ;;  %299 = vadd.xlane.f32.xlu2 %v298_v27 }
 0x31d   :  { %v258_v28 = vpop.xlane.xlu1 %257 }
 0x31e   :  { %v272_v29 = vsub.f32 %v234_v43, %v258_v28 }
 0x320   :  { %v1250_v30 = vpop.eup %1249  ;;  %v284_v32 = vmul.f32 1.442695, %v272_v29 }
 0x321   :  { %v301_v33 = vsel %vm243_vm8, %v1250_v30, 0.0 }
 0x322   :  { %1251 = vpow2.f32 %v284_v32  ;;  %302 = vadd.xlane.f32.xlu0 %v301_v33 }
 0x323   :  { %336 = vrot.lane.b32.xlu1 %v1432_v3, %s1358_s1 }
 0x325   :  { %v261_v34 = vpop.xlane.xlu0 %260 }
 0x326   :  { %v273_v35 = vsub.f32 %v236_v48, %v261_v34 }
 0x328   :  { %v1252_v37 = vpop.eup %1251  ;;  %v286_v38 = vmul.f32 1.442695, %v273_v35 }
 0x329   :  { %v304_v39 = vsel %vm243_vm8, %v1252_v37, 0.0 }
 0x32a   :  { %1253 = vpow2.f32 %v286_v38  ;;  %305 = vadd.xlane.f32.xlu2 %v304_v39 }
 0x32d   :  { %v264_v40 = vpop.xlane.xlu1 %263 }
 0x32e   :  { %v274_v42 = vsub.f32 %v239_v55, %v264_v40 }
 0x330   :  { %v1254_v43 = vpop.eup %1253  ;;  %v288_v44 = vmul.f32 1.442695, %v274_v42  ;;  %v1194_v42 = vld [vmem:[%s1664_s3 + $0x10] sm:$0xff] }
 0x331   :  { %v307_v45 = vsel %vm243_vm8, %v1254_v43, 0.0 }
 0x332   :  { %1255 = vpow2.f32 %v288_v44  ;;  %308 = vadd.xlane.f32.xlu0 %v307_v45 }
 0x335   :  { %v267_v47 = vpop.xlane.xlu0 %266 }
 0x336   :  { %v275_v51 = vsub.f32 %v241_v5, %v267_v47 }
 0x338   :  { %v1256_v52 = vpop.eup %1255  ;;  %v290_v3 = vmul.f32 1.442695, %v275_v51 }
 0x339   :  { %v310_v48 = vsel %vm243_vm8, %v1256_v52, 0.0 }
 0x33a   :  { %1257 = vpow2.f32 %v290_v3  ;;  %311 = vadd.xlane.f32.xlu2 %v310_v48 }
 0x340   :  { %v1258_v54 = vpop.eup %1257 }
 0x341   :  { %v313_v56 = vsel %vm243_vm8, %v1258_v54, 0.0 }
 0x342   :  { %314 = vadd.xlane.f32.xlu0 %v313_v56 }
 0x37d   :  { %v294_v55 = vpop.xlane.xlu1 %293 }
 0x385   :  { %v297_v59 = vpop.xlane.xlu0 %296 }
 0x386   :  { %1259 = vrcp.f32 %v297_v59 }
 0x387   :  { %1261 = vrcp.f32 %v294_v55 }
 0x38c   :  { %v1260_v4 = vpop.eup %1259 }
 0x38d   :  { %v1262_v6 = vpop.eup %1261  ;;  %v325_v7 = vmul.f32 %v1260_v4, %v1246_v18  ;;  %v300_v12 = vpop.xlane.xlu2 %299 }
 0x38e   :  { %v324_v9 = vmul.f32 %v1262_v6, %v1244_v13 }
 0x390   :  { %v332_v11 = vpack.c.bf16 %v325_v7, %v324_v9 }
 0x395   :  { %v337_v8 = vpop.permute.xlu1 %336  ;;  %v303_v5 = vpop.xlane.xlu0 %302 }
 0x396   :  { %358 = vmatpush.bf16.msra.mxu2 %v337_v8  ;;  %1263 = vrcp.f32 %v303_v5 }
 0x397   :  { %1265 = vrcp.f32 %v300_v12  ;;  %v1224_v12 = vld [vmem:[#allocation2 + $0x85] ss:$0 sm:$0xff] }
 0x399   :  { %1092 = vmatmul.msk.bf16.vlgmr.msra.gmra.mxu2 %vm243_vm8, %v332_v11 }
 0x39c   :  { %v1264_v14 = vpop.eup %1263 }
 0x39d   :  { %v1266_v15 = vpop.eup %1265  ;;  %v327_v16 = vmul.f32 %v1264_v14, %v1250_v30  ;;  %v306_v22 = vpop.xlane.xlu2 %305 }
 0x39e   :  { %v326_v17 = vmul.f32 %v1266_v15, %v1248_v24 }
 0x3a0   :  { %v333_v20 = vpack.c.bf16 %v327_v16, %v326_v17 }
 0x3a5   :  { %v309_v19 = vpop.xlane.xlu0 %308 }
 0x3a6   :  { %1267 = vrcp.f32 %v309_v19 }
 0x3a7   :  { %1269 = vrcp.f32 %v306_v22 }
 0x3a9   :  { %1093 = vmatmul.msk.bf16.gmra.mxu2 %vm243_vm8, %v333_v20 }
 0x3ac   :  { %v1268_v13 = vpop.eup %1267 }
 0x3ad   :  { %v1270_v18 = vpop.eup %1269  ;;  %v329_v23 = vmul.f32 %v1268_v13, %v1254_v43  ;;  %v312_v29 = vpop.xlane.xlu2 %311 }
 0x3ae   :  { %v328_v25 = vmul.f32 %v1270_v18, %v1252_v37  ;;  %v1195_v37 = vld [vmem:[%s1664_s3 + $0x18] sm:$0xff]  ;;  %v1197_v18 = vld [vmem:[%s1664_s3 + $0x28] sm:$0xff] }
 0x3af   :  { %417 = vmatpush.bf16.msra.mxu3 %v1195_v37  ;;  %500 = vmatpush.bf16.msrb.mxu2 %v1197_v18 }
 0x3b0   :  { %v334_v28 = vpack.c.bf16 %v329_v23, %v328_v25 }
 0x3b3   :  { %418 = vmatpush.bf16.msra.mxu3 %v1194_v42 }
 0x3b5   :  { %v315_v27 = vpop.xlane.xlu0 %314 }
 0x3b6   :  { %1271 = vrcp.f32 %v315_v27 }
 0x3b7   :  { %1273 = vrcp.f32 %v312_v29 }
 0x3b9   :  { %1094 = vmatmul.msk.bf16.gmra.mxu2 %vm243_vm8, %v334_v28 }
 0x3bc   :  { %v1272_v30 = vpop.eup %1271 }
 0x3bd   :  { %v1274_v24 = vpop.eup %1273  ;;  %v331_v32 = vmul.f32 %v1272_v30, %v1258_v54 }
 0x3be   :  { %v330_v33 = vmul.f32 %v1274_v24, %v1256_v52 }
 0x3c0   :  { %v335_v34 = vpack.c.bf16 %v331_v32, %v330_v33  ;;  %v1196_v33 = vld [vmem:[%s1664_s3 + $0x20] sm:$0xff] }
 0x3c1   :  { %501 = vmatpush.bf16.msrb.mxu2 %v1196_v33 }
 0x3c9   :  { %1095 = vmatmul.msk.bf16.gmra.mxu2 %vm243_vm8, %v335_v34 }
 0x41c   :  { %v360_v35 = vpop.f32.mrf.mxu2 }
 0x41d   :  { %v380_v52 = vmul.f32 %v360_v35, %v1416_v57 }
 0x424   :  { %v362_v38 = vpop.f32.mrf.mxu2 }
 0x425   :  { %v381_v3 = vmul.f32 %v362_v38, %v1420_v60 }
 0x42c   :  { %v365_v39 = vpop.f32.mrf.mxu2 }
 0x42d   :  { %v382_v47 = vmul.f32 %v365_v39, %v1418_v58 }
 0x42f   :  { %v388_v56 = vadd.f32 %v382_v47, %v380_v52 }
 0x434   :  { %v367_v40 = vpop.f32.mrf.mxu2 }
 0x435   :  { %v383_v51 = vmul.f32 %v367_v40, %v1426_v63 }
 0x437   :  { %v389_v59 = vadd.f32 %v383_v51, %v381_v3 }
 0x43c   :  { %v370_v43 = vpop.f32.mrf.mxu2 }
 0x43d   :  { %v384_v48 = vmul.f32 %v370_v43, %v1422_v61 }
 0x43f   :  { %v390_v6 = vadd.f32 %v388_v56, %v384_v48 }
 0x444   :  { %v372_v44 = vpop.f32.mrf.mxu2 }
 0x445   :  { %v385_v54 = vmul.f32 %v372_v44, %v1428_v0 }
 0x447   :  { %v391_v7 = vadd.f32 %v389_v59, %v385_v54 }
 0x44c   :  { %v375_v45 = vpop.f32.mrf.mxu2 }
 0x44d   :  { %v386_v55 = vmul.f32 %v375_v45, %v1424_v62 }
 0x44f   :  { %v392_v9 = vadd.f32 %v390_v6, %v386_v55 }
 0x454   :  { %v377_v4 = vpop.f32.mrf.mxu2 }
 0x455   :  { %v387_v8 = vmul.f32 %v377_v4, %v1430_v1  ;;  %v1225_v4 = vld [vmem:[#allocation2 + $0x82] ss:$0 sm:$0xff] }
 0x457   :  { %v393_v5 = vadd.f32 %v391_v7, %v387_v8 }
 0x459   :  { %v394_v11 = vpack.c.bf16 %v393_v5, %v392_v9  ;;  %v1226_v5 = vld [vmem:[#allocation2 + $0x83] ss:$0 sm:$0xff] }
 0x45b   :  { %1104 = vmatmul.msk.bf16.vlgmr.msra.gmra.mxu3 %vm92_vm0, %v394_v11 }
 0x4de   :  { %v420_v14 = vpop.f32.mrf.mxu3 }
 0x4df   :  { %v421_v15 = vadd.f32 %v1224_v12, %v420_v14 }
 0x4e1   :  { %v425_v16 = vadd.f32 %v421_v15, %v1409_v49 }
 0x4e3   :  { %v427_v17 = vsel %vm92_vm0, %v425_v16, 0.0 }
 0x4e4   :  { %428 = vadd.xlane.f32.xlu1 %v427_v17  ;;  %v1200_v17 = vld [vmem:[%s1664_s3 + $0x40] sm:$0xff] }
 0x4e6   :  { %v422_v19 = vpop.f32.mrf.mxu3 }
 0x4e7   :  { %v423_v20 = vadd.f32 %v1224_v12, %v422_v19  ;;  %v1199_v19 = vld [vmem:[%s1664_s3 + $0x38] sm:$0xff] }
 0x4e9   :  { %v426_v22 = vadd.f32 %v423_v20, %v1411_v50  ;;  %v1198_v20 = vld [vmem:[%s1664_s3 + $0x30] sm:$0xff] }
 0x4eb   :  { %v430_v13 = vsel %vm92_vm0, %v426_v22, 0.0 }
 0x4ec   :  { %431 = vadd.xlane.f32.xlu2 %v430_v13  ;;  %v1227_v13 = vld [vmem:[#allocation2 + $0x86] ss:$0 sm:$0xff] }
 0x557   :  { %v429_v23 = vpop.xlane.xlu1 %428 }
 0x558   :  { %v433_v25 = vmul.f32 %v429_v23, %v1395_v10 }
 0x55a   :  { %v435_v27 = vsub.f32 %v425_v16, %v433_v25  ;;  %v1201_v16 = vld [vmem:[%s1664_s3 + $0x48] sm:$0xff] }
 0x55b   :  { %544 = vmatpush.bf16.msrb.mxu3 %v1201_v16 }
 0x55c   :  { %v437_v49 = vmul.f32 %v435_v27, %v435_v27 }
 0x55e   :  { %v439_v28 = vsel %vm92_vm0, %v437_v49, 0.0 }
 0x55f   :  { %v432_v29 = vpop.xlane.xlu2 %431  ;;  %440 = vadd.xlane.f32.xlu0 %v439_v28  ;;  %545 = vmatpush.bf16.msrb.mxu3 %v1200_v17 }
 0x560   :  { %v434_v30 = vmul.f32 %v432_v29, %v1395_v10  ;;  %v1228_v29 = vld [vmem:[#allocation2 + $0x87] ss:$0 sm:$0xff] }
 0x562   :  { %v436_v50 = vsub.f32 %v426_v22, %v434_v30 }
 0x563   :  { %546 = vmatpush.bf16.msrb.mxu3 %v1199_v19 }
 0x564   :  { %v438_v24 = vmul.f32 %v436_v50, %v436_v50 }
 0x566   :  { %v442_v32 = vsel %vm92_vm0, %v438_v24, 0.0 }
 0x567   :  { %443 = vadd.xlane.f32.xlu2 %v442_v32  ;;  %547 = vmatpush.bf16.msrb.mxu3 %v1198_v20 }
 0x5d2   :  { %v441_v34 = vpop.xlane.xlu0 %440 }
 0x5d3   :  { %v445_v35 = vmul.f32 %v441_v34, %v1395_v10 }
 0x5d5   :  { %v447_v38 = vadd.f32 1e-12, %v445_v35 }
 0x5d7   :  { %1275 = vrsqrt.f32 %v447_v38  ;;  %vm455_vm10 = vweird.f32 %v447_v38 }
 0x5da   :  { %v444_v39 = vpop.xlane.xlu2 %443 }
 0x5db   :  { %v446_v37 = vmul.f32 %v444_v39, %v1395_v10 }
 0x5dd   :  { %v1276_v40 = vpop.eup %1275  ;;  %v448_v42 = vadd.f32 1e-12, %v446_v37 }
 0x5de   :  { %v450_v43 = vmul.f32 %v1276_v40, %v447_v38  ;;  %vm456_vm9 = vweird.f32 %v1276_v40 }
 0x5df   :  { %1277 = vrsqrt.f32 %v448_v42  ;;  %vm457_vm11 = vmor %vm455_vm10, %vm456_vm9  ;;  %vm465_vm13 = vweird.f32 %v448_v42 }
 0x5e0   :  { %v451_v44 = vmul.f32 %v1276_v40, %v450_v43 }
 0x5e2   :  { %v452_v45 = vmul.f32 0.5, %v451_v44 }
 0x5e4   :  { %v453_v47 = vsub.f32 1.5, %v452_v45 }
 0x5e5   :  { %v1278_v51 = vpop.eup %1277 }
 0x5e6   :  { %v454_v52 = vmul.f32 %v1276_v40, %v453_v47  ;;  %v460_v3 = vmul.f32 %v1278_v51, %v448_v42  ;;  %vm466_vm12 = vweird.f32 %v1278_v51 }
 0x5e7   :  { %vm467_vm14 = vmor %vm465_vm13, %vm466_vm12 }
 0x5e8   :  { %v461_v48 = vmul.f32 %v1278_v51, %v460_v3  ;;  %v458_v54 = vsel %vm457_vm11, %v1276_v40, %v454_v52  ;;  %v1203_v3 = vld [vmem:[%s1664_s3 + $0x58] sm:$0xff] }
 0x5e9   :  { %v469_v55 = vmul.f32 %v458_v54, %v435_v27  ;;  %657 = vmatpush.bf16.msrb.mxu0 %v1203_v3  ;;  %v1202_v54 = vld [vmem:[%s1664_s3 + $0x50] sm:$0xff] }
 0x5ea   :  { %v462_v56 = vmul.f32 0.5, %v461_v48 }
 0x5eb   :  { %v472_v9 = vmul.f32 %v1225_v4, %v469_v55 }
 0x5ec   :  { %v463_v59 = vsub.f32 1.5, %v462_v56 }
 0x5ed   :  { %v475_v12 = vadd.f32 %v1226_v5, %v472_v9  ;;  %658 = vmatpush.bf16.msrb.mxu0 %v1202_v54 }
 0x5ee   :  { %v464_v6 = vmul.f32 %v1278_v51, %v463_v59 }
 0x5f0   :  { %v468_v7 = vsel %vm467_vm14, %v1278_v51, %v464_v6 }
 0x5f1   :  { %v470_v8 = vmul.f32 %v468_v7, %v436_v50 }
 0x5f3   :  { %v473_v11 = vmul.f32 %v1225_v4, %v470_v8 }
 0x5f5   :  { %v476_v14 = vadd.f32 %v1226_v5, %v473_v11 }
 0x5f7   :  { %v477_v15 = vpack.c.bf16 %v476_v14, %v475_v12 }
 0x5f9   :  { %1113 = vmatmul.msk.bf16.vlgmr.msrb.gmra.mxu2 %vm92_vm0, %v477_v15 }
 0x67c   :  { %v503_v22 = vpop.f32.mrf.mxu2 }
 0x67d   :  { %v504_v18 = vadd.f32 %v1227_v13, %v503_v22 }
 0x67f   :  { %v508_v27 = vmax.f32 %v504_v18, 0.0 }
 0x684   :  { %v505_v23 = vpop.f32.mrf.mxu2 }
 0x685   :  { %v506_v25 = vadd.f32 %v1227_v13, %v505_v23  ;;  %v1229_v13 = vld [vmem:[#allocation2 + $0x88] ss:$0 sm:$0xff] }
 0x687   :  { %v509_v49 = vmax.f32 %v506_v25, 0.0 }
 0x689   :  { %v510_v28 = vpack.c.bf16 %v509_v49, %v508_v27  ;;  %v1230_v49 = vld [vmem:[#allocation2 + $0x89] ss:$0 sm:$0xff] }
 0x68b   :  { %1130 = vmatmul.msk.bf16.vlgmr.msrb.gmra.mxu3 %vm536_vm15, %v510_v28 }
 0x70e   :  { %v549_v30 = vpop.f32.mrf.mxu3 }
 0x70f   :  { %v550_v50 = vadd.f32 %v1228_v29, %v549_v30 }
 0x711   :  { %v554_v24 = vadd.f32 %v550_v50, %v475_v12 }
 0x713   :  { %v584_v32 = vsel %vm92_vm0, %v554_v24, 0.0 }
 0x714   :  { %585 = vadd.xlane.f32.xlu0 %v584_v32 }
 0x716   :  { %v551_v33 = vpop.f32.mrf.mxu3 }
 0x717   :  { %v552_v34 = vadd.f32 %v1228_v29, %v551_v33 }
 0x719   :  { %v555_v35 = vadd.f32 %v552_v34, %v476_v14 }
 0x71b   :  { %v587_v38 = vsel %vm92_vm0, %v555_v35, 0.0 }
 0x71c   :  { %588 = vadd.xlane.f32.xlu2 %v587_v38 }
 0x787   :  { %v586_v39 = vpop.xlane.xlu0 %585 }
 0x788   :  { %v590_v37 = vmul.f32 %v586_v39, %v1395_v10 }
 0x78a   :  { %v592_v40 = vsub.f32 %v554_v24, %v590_v37  ;;  %v1231_v24 = vld [vmem:[#allocation2 + $0x8c] ss:$0 sm:$0xff] }
 0x78c   :  { %v594_v42 = vmul.f32 %v592_v40, %v592_v40 }
 0x78e   :  { %v596_v43 = vsel %vm92_vm0, %v594_v42, 0.0 }
 0x78f   :  { %v589_v44 = vpop.xlane.xlu2 %588  ;;  %597 = vadd.xlane.f32.xlu0 %v596_v43 }
 0x790   :  { %v591_v45 = vmul.f32 %v589_v44, %v1395_v10 }
 0x792   :  { %v593_v47 = vsub.f32 %v555_v35, %v591_v45 }
 0x794   :  { %v595_v51 = vmul.f32 %v593_v47, %v593_v47 }
 0x796   :  { %v599_v52 = vsel %vm92_vm0, %v595_v51, 0.0 }
 0x797   :  { %600 = vadd.xlane.f32.xlu2 %v599_v52 }
 0x802   :  { %v598_v48 = vpop.xlane.xlu0 %597 }
 0x803   :  { %v602_v56 = vmul.f32 %v598_v48, %v1395_v10 }
 0x805   :  { %v604_v59 = vadd.f32 1e-12, %v602_v56 }
 0x807   :  { %1279 = vrsqrt.f32 %v604_v59  ;;  %vm612_vm2 = vweird.f32 %v604_v59 }
 0x80a   :  { %v601_v55 = vpop.xlane.xlu2 %600 }
 0x80b   :  { %v603_v4 = vmul.f32 %v601_v55, %v1395_v10 }
 0x80d   :  { %v1280_v6 = vpop.eup %1279  ;;  %v605_v7 = vadd.f32 1e-12, %v603_v4 }
 0x80e   :  { %v607_v8 = vmul.f32 %v1280_v6, %v604_v59  ;;  %vm613_vm1 = vweird.f32 %v1280_v6 }
 0x80f   :  { %1281 = vrsqrt.f32 %v605_v7  ;;  %vm614_vm3 = vmor %vm612_vm2, %vm613_vm1  ;;  %vm622_vm5 = vweird.f32 %v605_v7 }
 0x810   :  { %v608_v9 = vmul.f32 %v1280_v6, %v607_v8 }
 0x812   :  { %v609_v5 = vmul.f32 0.5, %v608_v9 }
 0x814   :  { %v610_v11 = vsub.f32 1.5, %v609_v5 }
 0x815   :  { %v1282_v12 = vpop.eup %1281 }
 0x816   :  { %v611_v14 = vmul.f32 %v1280_v6, %v610_v11  ;;  %v617_v15 = vmul.f32 %v1282_v12, %v605_v7  ;;  %vm623_vm4 = vweird.f32 %v1282_v12 }
 0x817   :  { %vm624_vm6 = vmor %vm622_vm5, %vm623_vm4 }
 0x818   :  { %v618_v16 = vmul.f32 %v1282_v12, %v617_v15  ;;  %v615_v17 = vsel %vm614_vm3, %v1280_v6, %v611_v14 }
 0x819   :  { %v626_v22 = vmul.f32 %v615_v17, %v592_v40 }
 0x81a   :  { %v619_v19 = vmul.f32 0.5, %v618_v16 }
 0x81b   :  { %v629_v27 = vmul.f32 %v1229_v13, %v626_v22 }
 0x81c   :  { %v620_v20 = vsub.f32 1.5, %v619_v19 }
 0x81d   :  { %v1557_v29 = vadd.f32 %v1230_v49, %v629_v27 }
 0x81e   :  { %v621_v18 = vmul.f32 %v1282_v12, %v620_v20 }
 0x820   :  { %v625_v23 = vsel %vm624_vm6, %v1282_v12, %v621_v18 }
 0x821   :  { %v627_v25 = vmul.f32 %v625_v23, %v593_v47 }
 0x823   :  { %v630_v28 = vmul.f32 %v1229_v13, %v627_v25 }
 0x825   :  { %v1559_v30 = vadd.f32 %v1230_v49, %v630_v28 }
 0x827   :  { %v634_v50 = vpack.c.bf16 %v1559_v30, %v1557_v29 }
 0x829   :  { %1139 = vmatmul.msk.bf16.vlgmr.msrb.gmra.mxu0 %vm92_vm0, %v634_v50 }
 0x8a6   :  { %v660_v32 = vpop.f32.mrf.mxu0 }
 0x8a7   :  { %v661_v33 = vadd.f32 %v1231_v24, %v660_v32 }
 0x8a9   :  { %v665_v34 = vmul.f32 0.35355338, %v661_v33 }
 0x8ab   :  { %v667_v40 = vmul.f32 %v665_v34, %v1416_v57  ;;  %v669_v42 = vmul.f32 %v665_v34, %v1418_v58  ;;  %v671_v43 = vmul.f32 %v665_v34, %v1422_v61  ;;  %v673_v44 = vmul.f32 %v665_v34, %v1424_v62 }
 0x8ae   :  { %v662_v35 = vpop.f32.mrf.mxu0 }
 0x8af   :  { %v663_v38 = vadd.f32 %v1231_v24, %v662_v35 }
 0x8b1   :  { %v666_v39 = vmul.f32 0.35355338, %v663_v38  ;;  %v1564_v37 = vpack.c.bf16 %v663_v38, %v661_v33 }
 0x8b3   :  { %v668_v45 = vmul.f32 %v666_v39, %v1420_v60  ;;  %681 = vrot.lane.b32.xlu0 %v1564_v37, %s1357_s28  ;;  %v670_v47 = vmul.f32 %v666_v39, %v1426_v63  ;;  %v672_v51 = vmul.f32 %v666_v39, %v1428_v0  ;;  %v674_v52 = vmul.f32 %v666_v39, %v1430_v1 }
 0x8b5   :  { %v675_v3 = vpack.c.bf16 %v668_v45, %v667_v40  ;;  %v676_v48 = vpack.c.bf16 %v670_v47, %v669_v42  ;;  %v677_v57 = vpack.c.bf16 %v672_v51, %v671_v43  ;;  %v678_v54 = vpack.c.bf16 %v674_v52, %v673_v44 }
 0x925   :  { %v682_v58 = vpop.permute.xlu0 %681 }
 0x926   :  { %v696_v61 = vsel %vm92_vm0, %v682_v58, 0 }
 0x927   :  { %705 = vmatpush.bf16.xpose.msra.mxu3 %v696_v61 }
 0x92e   :  { %1140 = vmatmul.msk.bf16.vlgmr.msra.gmra.mxu3 %vm92_vm0, %v675_v3 }
 0x93e   :  { %1141 = vmatmul.msk.bf16.gmra.mxu3 %vm92_vm0, %v676_v48 }
 0x94e   :  { %1142 = vmatmul.msk.bf16.gmra.mxu3 %vm92_vm0, %v677_v57 }
 0x95e   :  { %1143 = vmatmul.msk.bf16.gmra.mxu3 %vm92_vm0, %v678_v54 }
 0x9b1   :  { %v707_v60 = vpop.f32.mrf.mxu3 }
 0x9b2   :  { %v708_v62 = vadd.f32 %v707_v60, %v1452_v21 }
 0x9b4   :  { %v727_v63 = vsel %vm243_vm8, %v708_v62, -inf }
 0x9b5   :  { %728 = vmax.xlane.f32.xlu2 %v727_v63 }
 0x9b9   :  { %v709_v0 = vpop.f32.mrf.mxu3 }
 0x9ba   :  { %v710_v1 = vadd.f32 %v709_v0, %v1456_v26 }
 0x9bc   :  { %v730_v56 = vsel %vm243_vm8, %v710_v1, -inf }
 0x9bd   :  { %731 = vmax.xlane.f32.xlu2 %v730_v56 }
 0x9c1   :  { %v712_v59 = vpop.f32.mrf.mxu3 }
 0x9c2   :  { %v713_v55 = vadd.f32 %v712_v59, %v1460_v31 }
 0x9c4   :  { %v733_v4 = vsel %vm243_vm8, %v713_v55, -inf }
 0x9c5   :  { %734 = vmax.xlane.f32.xlu1 %v733_v4 }
 0x9c9   :  { %v714_v6 = vpop.f32.mrf.mxu3 }
 0x9ca   :  { %v715_v7 = vadd.f32 %v714_v6, %v1464_v36 }
 0x9cc   :  { %v736_v21 = vsel %vm243_vm8, %v715_v7, -inf }
 0x9cd   :  { %737 = vmax.xlane.f32.xlu2 %v736_v21 }
 0x9d1   :  { %v717_v8 = vpop.f32.mrf.mxu3 }
 0x9d2   :  { %v718_v9 = vadd.f32 %v717_v8, %v1468_v41 }
 0x9d4   :  { %v739_v26 = vsel %vm243_vm8, %v718_v9, -inf }
 0x9d5   :  { %740 = vmax.xlane.f32.xlu1 %v739_v26 }
 0x9d9   :  { %v719_v5 = vpop.f32.mrf.mxu3 }
 0x9da   :  { %v720_v11 = vadd.f32 %v719_v5, %v1472_v46 }
 0x9dc   :  { %v742_v31 = vsel %vm243_vm8, %v720_v11, -inf }
 0x9dd   :  { %743 = vmax.xlane.f32.xlu0 %v742_v31 }
 0x9e1   :  { %v722_v12 = vpop.f32.mrf.mxu3 }
 0x9e2   :  { %v723_v14 = vadd.f32 %v722_v12, %v1476_v53 }
 0x9e4   :  { %v745_v36 = vsel %vm243_vm8, %v723_v14, -inf }
 0x9e5   :  { %746 = vmax.xlane.f32.xlu2 %v745_v36 }
 0x9e9   :  { %v724_v15 = vpop.f32.mrf.mxu3 }
 0x9ea   :  { %v725_v16 = vadd.f32 %v724_v15, %v1480_v2 }
 0x9ec   :  { %v748_v41 = vsel %vm243_vm8, %v725_v16, -inf }
 0x9ed   :  { %749 = vmax.xlane.f32.xlu1 %v748_v41 }
 0xa28   :  { %v729_v17 = vpop.xlane.xlu2 %728 }
 0xa29   :  { %v751_v19 = vsub.f32 %v708_v62, %v729_v17 }
 0xa2b   :  { %v759_v20 = vmul.f32 1.442695, %v751_v19 }
 0xa2d   :  { %1283 = vpow2.f32 %v759_v20 }
 0xa30   :  { %v732_v46 = vpop.xlane.xlu2 %731 }
 0xa31   :  { %v752_v22 = vsub.f32 %v710_v1, %v732_v46 }
 0xa33   :  { %v1284_v13 = vpop.eup %1283  ;;  %v761_v18 = vmul.f32 1.442695, %v752_v22 }
 0xa34   :  { %v775_v23 = vsel %vm243_vm8, %v1284_v13, 0.0 }
 0xa35   :  { %1285 = vpow2.f32 %v761_v18  ;;  %776 = vadd.xlane.f32.xlu2 %v775_v23 }
 0xa38   :  { %v735_v53 = vpop.xlane.xlu1 %734 }
 0xa39   :  { %v753_v25 = vsub.f32 %v713_v55, %v735_v53 }
 0xa3b   :  { %v1286_v27 = vpop.eup %1285  ;;  %v763_v49 = vmul.f32 1.442695, %v753_v25 }
 0xa3c   :  { %v778_v2 = vsel %vm243_vm8, %v1286_v27, 0.0 }
 0xa3d   :  { %1287 = vpow2.f32 %v763_v49  ;;  %779 = vadd.xlane.f32.xlu1 %v778_v2  ;;  %v1205_v2 = vld [vmem:[%s1664_s3 + $0x68] sm:$0xff] }
 0xa3e   :  { %900 = vmatpush.bf16.msra.mxu2 %v1205_v2 }
 0xa40   :  { %v738_v28 = vpop.xlane.xlu2 %737 }
 0xa41   :  { %v754_v50 = vsub.f32 %v715_v7, %v738_v28  ;;  %v1204_v28 = vld [vmem:[%s1664_s3 + $0x60] sm:$0xff] }
 0xa42   :  { %901 = vmatpush.bf16.msra.mxu2 %v1204_v28 }
 0xa43   :  { %v1288_v24 = vpop.eup %1287  ;;  %v765_v32 = vmul.f32 1.442695, %v754_v50 }
 0xa44   :  { %v781_v33 = vsel %vm243_vm8, %v1288_v24, 0.0 }
 0xa45   :  { %1289 = vpow2.f32 %v765_v32  ;;  %782 = vadd.xlane.f32.xlu1 %v781_v33  ;;  %v1319_v33 = vld [vmem:[#allocation2 + $0x10] sm:$0xff] }
 0xa48   :  { %v741_v34 = vpop.xlane.xlu1 %740 }
 0xa49   :  { %v755_v35 = vsub.f32 %v718_v9, %v741_v34 }
 0xa4b   :  { %v1290_v38 = vpop.eup %1289  ;;  %v767_v39 = vmul.f32 1.442695, %v755_v35  ;;  %v1320_v35 = vld [vmem:[#allocation2 + $0x18] sm:$0xff] }
 0xa4c   :  { %v784_v40 = vsel %vm243_vm8, %v1290_v38, 0.0 }
 0xa4d   :  { %1291 = vpow2.f32 %v767_v39  ;;  %819 = vrot.lane.b32.xlu2 %v1564_v37, %s1358_s1  ;;  %785 = vadd.xlane.f32.xlu1 %v784_v40  ;;  %v1321_v39 = vld [vmem:[#allocation2] sm:$0xff] }
 0xa50   :  { %v744_v42 = vpop.xlane.xlu0 %743 }
 0xa51   :  { %v756_v43 = vsub.f32 %v720_v11, %v744_v42  ;;  %v1322_v42 = vld [vmem:[#allocation2 + $0x8] sm:$0xff] }
 0xa53   :  { %v1292_v44 = vpop.eup %1291  ;;  %v769_v45 = vmul.f32 1.442695, %v756_v43 }
 0xa54   :  { %v787_v47 = vsel %vm243_vm8, %v1292_v44, 0.0 }
 0xa55   :  { %1293 = vpow2.f32 %v769_v45  ;;  %788 = vadd.xlane.f32.xlu1 %v787_v47  ;;  %v1324_v47 = vld [vmem:[#allocation2 + $0x28] sm:$0xff] }
 0xa58   :  { %v747_v48 = vpop.xlane.xlu2 %746 }
 0xa59   :  { %v757_v58 = vsub.f32 %v723_v14, %v747_v48  ;;  %v1325_v48 = vld [vmem:[#allocation2 + $0x30] sm:$0xff] }
 0xa5b   :  { %v1294_v51 = vpop.eup %1293  ;;  %v771_v37 = vmul.f32 1.442695, %v757_v58 }
 0xa5c   :  { %v790_v52 = vsel %vm243_vm8, %v1294_v51, 0.0 }
 0xa5d   :  { %791 = vadd.xlane.f32.xlu0 %v790_v52 }
 0xa60   :  { %v750_v3 = vpop.xlane.xlu1 %749 }
 0xa61   :  { %v758_v57 = vsub.f32 %v725_v16, %v750_v3 }
 0xa63   :  { %v773_v54 = vmul.f32 1.442695, %v758_v57 }
 0xa65   :  { %1295 = vpow2.f32 %v773_v54 }
 0xa66   :  { %1297 = vpow2.f32 %v771_v37 }
 0xa6b   :  { %v1296_v61 = vpop.eup %1295 }
 0xa6c   :  { %v796_v60 = vsel %vm243_vm8, %v1296_v61, 0.0  ;;  %v1298_v62 = vpop.eup %1297 }
 0xa6d   :  { %797 = vadd.xlane.f32.xlu1 %v796_v60  ;;  %v793_v63 = vsel %vm243_vm8, %v1298_v62, 0.0 }
 0xa76   :  { %794 = vadd.xlane.f32.xlu2 %v793_v63 }
 0xaa8   :  { %v777_v0 = vpop.xlane.xlu2 %776 }
 0xaa9   :  { %1299 = vrcp.f32 %v777_v0 }
 0xaaf   :  { %v1300_v59 = vpop.eup %1299 }
 0xab0   :  { %v780_v1 = vpop.xlane.xlu1 %779  ;;  %v820_v56 = vpop.permute.xlu2 %819  ;;  %v807_v4 = vmul.f32 %v1300_v59, %v1284_v13 }
 0xab1   :  { %1301 = vrcp.f32 %v780_v1  ;;  %841 = vmatpush.bf16.msra.mxu0 %v820_v56  ;;  %v1232_v1 = vld [vmem:[#allocation2 + $0x8d] ss:$0 sm:$0xff] }
 0xab7   :  { %v1302_v55 = vpop.eup %1301 }
 0xab8   :  { %v808_v6 = vmul.f32 %v1302_v55, %v1286_v27  ;;  %v783_v7 = vpop.xlane.xlu1 %782 }
 0xab9   :  { %1303 = vrcp.f32 %v783_v7 }
 0xaba   :  { %v815_v21 = vpack.c.bf16 %v808_v6, %v807_v4 }
 0xabc   :  { %1144 = vmatmul.msk.bf16.vlgmr.msra.gmra.mxu0 %vm243_vm8, %v815_v21 }
 0xabf   :  { %v1304_v9 = vpop.eup %1303 }
 0xac0   :  { %v786_v8 = vpop.xlane.xlu1 %785  ;;  %v809_v5 = vmul.f32 %v1304_v9, %v1288_v24  ;;  %v1207_v9 = vld [vmem:[%s1664_s3 + $0x78] sm:$0xff] }
 0xac1   :  { %1305 = vrcp.f32 %v786_v8  ;;  %983 = vmatpush.bf16.msrb.mxu1 %v1207_v9 }
 0xac7   :  { %v1306_v26 = vpop.eup %1305 }
 0xac8   :  { %v810_v11 = vmul.f32 %v1306_v26, %v1290_v38  ;;  %v789_v12 = vpop.xlane.xlu1 %788 }
 0xac9   :  { %1307 = vrcp.f32 %v789_v12 }
 0xaca   :  { %v816_v31 = vpack.c.bf16 %v810_v11, %v809_v5 }
 0xacc   :  { %1145 = vmatmul.msk.bf16.gmra.mxu0 %vm243_vm8, %v816_v31 }
 0xacf   :  { %v1308_v36 = vpop.eup %1307 }
 0xad0   :  { %v792_v14 = vpop.xlane.xlu0 %791  ;;  %v811_v16 = vmul.f32 %v1308_v36, %v1292_v44  ;;  %v1323_v44 = vld [vmem:[#allocation2 + $0x20] sm:$0xff] }
 0xad1   :  { %1309 = vrcp.f32 %v792_v14 }
 0xad7   :  { %v1310_v15 = vpop.eup %1309 }
 0xad8   :  { %v812_v41 = vmul.f32 %v1310_v15, %v1294_v51 }
 0xada   :  { %v817_v17 = vpack.c.bf16 %v812_v41, %v811_v16  ;;  %v1206_v16 = vld [vmem:[%s1664_s3 + $0x70] sm:$0xff] }
 0xadb   :  { %984 = vmatpush.bf16.msrb.mxu1 %v1206_v16 }
 0xadc   :  { %1146 = vmatmul.msk.bf16.gmra.mxu0 %vm243_vm8, %v817_v17 }
 0xae0   :  { %v798_v19 = vpop.xlane.xlu1 %797 }
 0xae1   :  { %1311 = vrcp.f32 %v798_v19 }
 0xae7   :  { %v1312_v46 = vpop.eup %1311 }
 0xae8   :  { %v814_v18 = vmul.f32 %v1312_v46, %v1296_v61  ;;  %v1326_v61 = vld [vmem:[#allocation2 + $0x38] sm:$0xff] }
 0xae9   :  { %v795_v20 = vpop.xlane.xlu2 %794 }
 0xaea   :  { %1313 = vrcp.f32 %v795_v20 }
 0xaf0   :  { %v1314_v22 = vpop.eup %1313 }
 0xaf1   :  { %v813_v13 = vmul.f32 %v1314_v22, %v1298_v62 }
 0xaf3   :  { %v818_v23 = vpack.c.bf16 %v814_v18, %v813_v13 }
 0xaf5   :  { %1147 = vmatmul.msk.bf16.gmra.mxu0 %vm243_vm8, %v818_v23 }
 0xb39   :  { %v843_v53 = vpop.f32.mrf.mxu0 }
 0xb3a   :  { %v863_v40 = vmul.f32 %v1321_v39, %v843_v53 }
 0xb41   :  { %v845_v25 = vpop.f32.mrf.mxu0 }
 0xb42   :  { %v864_v43 = vmul.f32 %v1322_v42, %v845_v25 }
 0xb49   :  { %v848_v27 = vpop.f32.mrf.mxu0 }
 0xb4a   :  { %v865_v34 = vmul.f32 %v1319_v33, %v848_v27 }
 0xb4c   :  { %v871_v52 = vadd.f32 %v865_v34, %v863_v40  ;;  %v1234_v40 = vld [vmem:[#allocation2 + $0x8b] ss:$0 sm:$0xff] }
 0xb51   :  { %v850_v49 = vpop.f32.mrf.mxu0 }
 0xb52   :  { %v866_v38 = vmul.f32 %v1320_v35, %v850_v49 }
 0xb54   :  { %v872_v3 = vadd.f32 %v866_v38, %v864_v43 }
 0xb59   :  { %v853_v50 = vpop.f32.mrf.mxu0 }
 0xb5a   :  { %v867_v45 = vmul.f32 %v1323_v44, %v853_v50 }
 0xb5c   :  { %v873_v58 = vadd.f32 %v871_v52, %v867_v45  ;;  %v1209_v52 = vld [vmem:[%s1664_s3 + $0x88] sm:$0xff] }
 0xb61   :  { %v855_v24 = vpop.f32.mrf.mxu0 }
 0xb62   :  { %v868_v51 = vmul.f32 %v1324_v47, %v855_v24  ;;  %v1211_v47 = vld [vmem:[%s1664_s3 + $0x98] sm:$0xff] }
 0xb63   :  { %1026 = vmatpush.bf16.msrb.mxu2 %v1211_v47 }
 0xb64   :  { %v874_v37 = vadd.f32 %v872_v3, %v868_v51  ;;  %v1210_v51 = vld [vmem:[%s1664_s3 + $0x90] sm:$0xff]  ;;  %v1208_v3 = vld [vmem:[%s1664_s3 + $0x80] sm:$0xff] }
 0xb67   :  { %1027 = vmatpush.bf16.msrb.mxu2 %v1210_v51 }
 0xb6b   :  { %1028 = vmatpush.bf16.msrb.mxu2 %v1209_v52 }
 0xb6f   :  { %1029 = vmatpush.bf16.msrb.mxu2 %v1208_v3 }
 0xb72   :  { %v858_v32 = vpop.f32.mrf.mxu0 }
 0xb73   :  { %v869_v57 = vmul.f32 %v1325_v48, %v858_v32 }
 0xb75   :  { %v875_v62 = vadd.f32 %v873_v58, %v869_v57  ;;  %v1235_v57 = vld [vmem:[#allocation2 + $0x8e] ss:$0 sm:$0xff] }
 0xb7a   :  { %v860_v54 = vpop.f32.mrf.mxu0 }
 0xb7b   :  { %v870_v60 = vmul.f32 %v1326_v61, %v860_v54 }
 0xb7d   :  { %v876_v63 = vadd.f32 %v874_v37, %v870_v60 }
 0xb7f   :  { %v877_v0 = vpack.c.bf16 %v876_v63, %v875_v62  ;;  %v1213_v63 = vld [vmem:[%s1664_s3 + $0xa8] sm:$0xff] }
 0xb80   :  { %1064 = vmatpush.bf16.msra.mxu1 %v1213_v63 }
 0xb81   :  { %1156 = vmatmul.msk.bf16.vlgmr.msra.gmra.mxu2 %vm92_vm0, %v877_v0  ;;  %v1212_v0 = vld [vmem:[%s1664_s3 + $0xa0] sm:$0xff] }
 0xb84   :  { %1065 = vmatpush.bf16.msra.mxu1 %v1212_v0 }
 0xc04   :  { %v903_v56 = vpop.f32.mrf.mxu2 }
 0xc05   :  { %v904_v59 = vadd.f32 %v1232_v1, %v903_v56  ;;  %v1236_v56 = vld [vmem:[#allocation2 + $0x8f] ss:$0 sm:$0xff] }
 0xc07   :  { %v908_v55 = vadd.f32 %v904_v59, %v1557_v29 }
 0xc09   :  { %v910_v4 = vsel %vm92_vm0, %v908_v55, 0.0 }
 0xc0a   :  { %911 = vadd.xlane.f32.xlu0 %v910_v4 }
 0xc0c   :  { %v905_v6 = vpop.f32.mrf.mxu2 }
 0xc0d   :  { %v906_v7 = vadd.f32 %v1232_v1, %v905_v6 }
 0xc0f   :  { %v909_v21 = vadd.f32 %v906_v7, %v1559_v30 }
 0xc11   :  { %v913_v8 = vsel %vm92_vm0, %v909_v21, 0.0 }
 0xc12   :  { %914 = vadd.xlane.f32.xlu1 %v913_v8 }
 0xc7d   :  { %v912_v26 = vpop.xlane.xlu0 %911 }
 0xc7e   :  { %v916_v5 = vmul.f32 %v912_v26, %v1395_v10 }
 0xc80   :  { %v918_v11 = vsub.f32 %v908_v55, %v916_v5 }
 0xc82   :  { %v920_v29 = vmul.f32 %v918_v11, %v918_v11 }
 0xc84   :  { %v922_v31 = vsel %vm92_vm0, %v920_v29, 0.0 }
 0xc85   :  { %v915_v12 = vpop.xlane.xlu1 %914  ;;  %923 = vadd.xlane.f32.xlu0 %v922_v31 }
 0xc86   :  { %v917_v14 = vmul.f32 %v915_v12, %v1395_v10 }
 0xc88   :  { %v919_v30 = vsub.f32 %v909_v21, %v917_v14 }
 0xc8a   :  { %v921_v36 = vmul.f32 %v919_v30, %v919_v30 }
 0xc8c   :  { %v925_v15 = vsel %vm92_vm0, %v921_v36, 0.0 }
 0xc8d   :  { %926 = vadd.xlane.f32.xlu1 %v925_v15 }
 0xcf8   :  { %v924_v41 = vpop.xlane.xlu0 %923 }
 0xcf9   :  { %v928_v17 = vmul.f32 %v924_v41, %v1395_v10 }
 0xcfb   :  { %v930_v19 = vadd.f32 1e-12, %v928_v17 }
 0xcfd   :  { %1315 = vrsqrt.f32 %v930_v19  ;;  %vm938_vm8 = vweird.f32 %v930_v19 }
 0xd00   :  { %v927_v20 = vpop.xlane.xlu1 %926 }
 0xd01   :  { %v929_v46 = vmul.f32 %v927_v20, %v1395_v10  ;;  %v1233_v10 = vld [vmem:[#allocation2 + $0x8a] ss:$0 sm:$0xff] }
 0xd03   :  { %v1316_v22 = vpop.eup %1315  ;;  %v931_v13 = vadd.f32 1e-12, %v929_v46 }
 0xd04   :  { %v933_v18 = vmul.f32 %v1316_v22, %v930_v19  ;;  %vm939_vm7 = vweird.f32 %v1316_v22 }
 0xd05   :  { %1317 = vrsqrt.f32 %v931_v13  ;;  %vm940_vm9 = vmor %vm938_vm8, %vm939_vm7  ;;  %vm948_vm11 = vweird.f32 %v931_v13 }
 0xd06   :  { %v934_v23 = vmul.f32 %v1316_v22, %v933_v18 }
 0xd08   :  { %v935_v53 = vmul.f32 0.5, %v934_v23 }
 0xd0a   :  { %v936_v25 = vsub.f32 1.5, %v935_v53 }
 0xd0b   :  { %v1318_v27 = vpop.eup %1317 }
 0xd0c   :  { %v937_v49 = vmul.f32 %v1316_v22, %v936_v25  ;;  %v943_v2 = vmul.f32 %v1318_v27, %v931_v13  ;;  %vm949_vm10 = vweird.f32 %v1318_v27 }
 0xd0d   :  { %vm950_vm12 = vmor %vm948_vm11, %vm949_vm10 }
 0xd0e   :  { %v944_v28 = vmul.f32 %v1318_v27, %v943_v2  ;;  %v941_v50 = vsel %vm940_vm9, %v1316_v22, %v937_v49 }
 0xd0f   :  { %v952_v33 = vmul.f32 %v941_v50, %v918_v11 }
 0xd10   :  { %v945_v24 = vmul.f32 0.5, %v944_v28 }
 0xd11   :  { %v955_v39 = vmul.f32 %v1233_v10, %v952_v33 }
 0xd12   :  { %v946_v32 = vsub.f32 1.5, %v945_v24 }
 0xd13   :  { %v958_v43 = vadd.f32 %v1234_v40, %v955_v39 }
 0xd14   :  { %v947_v34 = vmul.f32 %v1318_v27, %v946_v32 }
 0xd16   :  { %v951_v35 = vsel %vm950_vm12, %v1318_v27, %v947_v34 }
 0xd17   :  { %v953_v38 = vmul.f32 %v951_v35, %v919_v30 }
 0xd19   :  { %v956_v42 = vmul.f32 %v1233_v10, %v953_v38 }
 0xd1b   :  { %v959_v44 = vadd.f32 %v1234_v40, %v956_v42 }
 0xd1d   :  { %v960_v45 = vpack.c.bf16 %v959_v44, %v958_v43 }
 0xd1f   :  { %1165 = vmatmul.msk.bf16.vlgmr.msrb.gmra.mxu1 %vm92_vm0, %v960_v45 }
 0xd9c   :  { %v986_v48 = vpop.f32.mrf.mxu1 }
 0xd9d   :  { %v987_v54 = vadd.f32 %v1235_v57, %v986_v48 }
 0xd9f   :  { %v991_v61 = vmax.f32 %v987_v54, 0.0 }
 0xda4   :  { %v988_v58 = vpop.f32.mrf.mxu1 }
 0xda5   :  { %v989_v37 = vadd.f32 %v1235_v57, %v988_v58 }
 0xda7   :  { %v992_v60 = vmax.f32 %v989_v37, 0.0 }
 0xda9   :  { %v993_v62 = vpack.c.bf16 %v992_v60, %v991_v61 }
 0xdab   :  { %1182 = vmatmul.msk.bf16.vlgmr.msrb.gmra.mxu2 %vm536_vm15, %v993_v62 }
 0xe2e   :  { %v1031_v1 = vpop.f32.mrf.mxu2 }
 0xe2f   :  { %v1032_v59 = vadd.f32 %v1236_v56, %v1031_v1 }
 0xe31   :  { %v1036_v6 = vadd.f32 %v1032_v59, %v958_v43 }
 0xe36   :  { %v1033_v55 = vpop.f32.mrf.mxu2 }
 0xe37   :  { %v1034_v4 = vadd.f32 %v1236_v56, %v1033_v55 }
 0xe39   :  { %v1037_v7 = vadd.f32 %v1034_v4, %v959_v44 }
 0xe3b   :  { %v1042_v21 = vpack.c.bf16 %v1037_v7, %v1036_v6 }
 0xe3d   :  { %1191 = vmatmul.msk.bf16.vlgmr.msra.gmra.mxu1 %vm92_vm0, %v1042_v21 }
 0xeba   :  { %v1067_v8 = vpop.f32.mrf.mxu1 }
 0xebb   :  { %1072 = vst [vmem:[%s1665_s4] sm:$0xff] %v1067_v8 }
 0xec2   :  { %v1069_v9 = vpop.f32.mrf.mxu1 }
 0xec3   :  { %1073 = vst [vmem:[%s1665_s4 + $0x8] sm:$0xff] %v1069_v9 }
 0xec4   :  { %1078 = vsyncpa [#allocation3], 1 }

</bundles_post_ra>
